<compile_context>
chip_gen: v5e
topology: v5e:2x2
jax: 0.10.0
libtpu: 0.0.40
codegen_flags: <defaults>
</compile_context>

<pallas_src>
import functools
import math

import jax
import jax.numpy as jnp
import numpy as np
from jax.experimental import pallas as pl
from jax.experimental.pallas import tpu as pltpu


def _round_up(x, m):
    return (x + m - 1) // m * m


# ----------------------------------------------------------------------------
# Fused decoder kernel: single grid step, whole network on VMEM-resident data.
#   x_ref   : (B*T, C_emb)         batch-packed input activations
#   w_ref   : (Wrows, slab_cols)   all conv weights + biases (static offsets)
#   m_ref   : (Mrows, mask_cols)   0/1 padding / batch-boundary masks
#   rep_ref : (Rrows, rep_cols)    block-diagonal nearest-x2 replication mats
#   o_ref   : (B*L_final, out_pad) lane-dense output
# All offsets / shapes / dilations live in `plan` (static Python ints).
# ----------------------------------------------------------------------------
def _decoder_kernel(x_ref, w_ref, m_ref, rep_ref, o_ref, *, plan, wdtype):

    def shifted(x, shift):
        # static sublane rotation (XLU); wrapped-in rows are zeroed by masks
        s = shift % x.shape[0]
        return x if s == 0 else pltpu.roll(x, s, axis=0)

    def bias(off, cout):
        return w_ref[off:off + 1, 0:cout].astype(jnp.float32)

    def conv3(x, ent, L):
        # 'same' k=3 conv with dilation d on the batch-packed slab.
        cin, cout, d = ent["cin"], ent["cout"], ent["dil"]
        R = x.shape[0]
        lo, hi = plan["masks"][(L, d)]
        xm = shifted(x, d) * m_ref[lo:lo + R, 0:cin]         # x[i-d], zero-pad
        xp = shifted(x, -d) * m_ref[hi:hi + R, 0:cin]        # x[i+d], zero-pad
        o0, o1, o2 = ent["taps"]
        y = jnp.dot(xm.astype(wdtype), w_ref[o0:o0 + cin, 0:cout],
                    preferred_element_type=jnp.float32)
        y = y + jnp.dot(x.astype(wdtype), w_ref[o1:o1 + cin, 0:cout],
                        preferred_element_type=jnp.float32)
        y = y + jnp.dot(xp.astype(wdtype), w_ref[o2:o2 + cin, 0:cout],
                        preferred_element_type=jnp.float32)
        return y + bias(ent["b"], cout)

    def conv1(x, ent):
        cin, cout = ent["cin"], ent["cout"]
        y = jnp.dot(x.astype(wdtype), w_ref[ent["w"]:ent["w"] + cin, 0:cout],
                    preferred_element_type=jnp.float32)
        return y + bias(ent["b"], cout)

    def upsample2(x, level):
        # nearest x2 along length: one MXU dot with a host-precomputed 0/1
        # block-diagonal matrix (exact in f32, no in-kernel iota/select).
        off, rows, cols = plan["reps"][level]
        return jnp.dot(rep_ref[off:off + rows, 0:cols], x,
                       preferred_element_type=jnp.float32)

    x = x_ref[...].astype(jnp.float32)                       # (B*T, C_emb)
    L = plan["T"]

    # Conv1d(output_emb_width, width, 3, 1, 1) + ReLU
    x = jnp.maximum(conv3(x, plan["conv_in"], L), 0.0)

    # down_t x [ Resnet1D(reverse_dilation) -> Upsample x2 -> Conv1d(3) ]
    for lvl, blk in enumerate(plan["blocks"]):
        for rb in blk["res"]:                                # ResConv1DBlock
            h = conv3(jnp.maximum(x, 0.0), rb["c1"], L)
            h = conv1(jnp.maximum(h, 0.0), rb["c2"])
            x = x + h                                        # residual add
        x = upsample2(x, lvl)
        L = L * 2
        x = conv3(x, blk["up"], L)                           # conv_up

    # Conv1d(width, width, 3, 1, 1) + ReLU
    x = jnp.maximum(conv3(x, plan["conv_mid"], L), 0.0)
    # Conv1d(width, input_emb_width, 3, 1, 1) -- out channels lane-padded
    o_ref[...] = conv3(x, plan["conv_out"], L).astype(o_ref.dtype)
    # TODO(synk): at production widths (512+) stage x/h in explicit VMEM
    # ping-pong scratch and tile along L (vreg/VMEM-pressure review item).


# ----------------------------------------------------------------------------
# Parameter init (deterministic, PyTorch Conv1d-like uniform init).
# Weights stored as (K, Cin, Cout) == torch weight (Cout, Cin, K) transposed.
# ----------------------------------------------------------------------------
def _conv_params(key, cin, cout, k):
    kw, kb = jax.random.split(key)
    scale = 1.0 / math.sqrt(cin * k)
    w = jax.random.uniform(kw, (k, cin, cout), jnp.float32, -scale, scale)
    b = jax.random.uniform(kb, (cout,), jnp.float32, -scale, scale)
    return w, b


def init_params(key, input_emb_width, output_emb_width, down_t, width, depth,
                dilation_growth_rate):
    keys = jax.random.split(key, 3 + down_t)
    params = {}
    params["conv_in"] = _conv_params(keys[0], output_emb_width, width, 3)
    blocks = []
    for i in range(down_t):
        bk = jax.random.split(keys[3 + i], depth * 2 + 1)
        # Resnet1D with reverse_dilation=True: execution order is reversed.
        dilations = [dilation_growth_rate ** d for d in range(depth)][::-1]
        res = []
        for j, dil in enumerate(dilations):
            w1, b1 = _conv_params(bk[2 * j], width, width, 3)
            w2, b2 = _conv_params(bk[2 * j + 1], width, width, 1)
            res.append({"conv1": (w1, b1), "conv2": (w2, b2), "dilation": dil})
        blocks.append({"res": res, "conv_up": _conv_params(bk[-1], width, width, 3)})
    params["blocks"] = blocks
    params["conv_mid"] = _conv_params(keys[1], width, width, 3)
    params["conv_out"] = _conv_params(keys[2], width, input_emb_width, 3)
    return params


# ----------------------------------------------------------------------------
# Decoder_2 forward (top=False): one fused pallas_call, grid=(1,).
# ----------------------------------------------------------------------------
@functools.partial(jax.jit,
                   static_argnames=("down_t", "depth", "rate", "input_emb_width"))
def decoder2_forward(params, x_ncl, *, down_t, depth, rate, input_emb_width):
    B, c_emb, T = x_ncl.shape
    width = params["conv_mid"][0].shape[1]                   # (K, Cin, Cout)
    L_final = T * (2 ** down_t)
    out_pad = _round_up(max(input_emb_width, 128), 128)      # lane-dense output
    slab_cols = max(width, out_pad)
    mask_cols = max(width, c_emb)
    # bf16 dot operands only pay off at production widths (v6e/v7x MXU);
    # at the demo width=32 the kernel is overhead-bound, stay exact f32.
    wdtype = jnp.bfloat16 if width >= 128 else jnp.float32

    # ---- pack batch along the sublane/length axis: NCL -> (B*T, C) ----------
    x_packed = jnp.transpose(x_ncl, (0, 2, 1)).reshape(B * T, c_emb)

    # ---- one lane-padded weight/bias slab, static 8-aligned row offsets -----
    w_blocks = []
    state = {"cursor": 0, "flops": 0}

    def put(mat):
        r, c = mat.shape
        r8 = _round_up(r, 8)
        w_blocks.append(jnp.pad(mat.astype(wdtype),
                                ((0, r8 - r), (0, slab_cols - c))))
        off = state["cursor"]
        state["cursor"] += r8
        return off

    def conv3_entry(wb, dil, rows_out, cout_eff=None):
        w, b = wb
        _, cin, cout = w.shape
        cout_eff = cout if cout_eff is None else cout_eff
        state["flops"] += 2 * rows_out * cin * cout_eff * 3
        return {"taps": tuple(put(w[j]) for j in range(3)),
                "b": put(b.reshape(1, cout)),
                "cin": cin, "cout": cout_eff, "dil": dil}

    def conv1_entry(wb, rows_out):
        w, b = wb
        _, cin, cout = w.shape
        state["flops"] += 2 * rows_out * cin * cout
        return {"w": put(w[0]), "b": put(b.reshape(1, cout)),
                "cin": cin, "cout": cout}

    dilations = [rate ** d for d in range(depth)][::-1]      # reverse_dilation
    plan = {"T": T}
    mask_keys = set()
    L = T
    mask_keys.add((L, 1))
    plan["conv_in"] = conv3_entry(params["conv_in"], 1, B * L)
    plan["blocks"] = []
    for lvl in range(down_t):
        blk = params["blocks"][lvl]
        res_entries = []
        for j, dil in enumerate(dilations):
            rb = blk["res"][j]
            mask_keys.add((L, dil))
            res_entries.append({"c1": conv3_entry(rb["conv1"], dil, B * L),
                                "c2": conv1_entry(rb["conv2"], B * L)})
        L *= 2
        mask_keys.add((L, 1))
        state["flops"] += 2 * (B * L) * (B * L // 2) * width  # upsample dot
        plan["blocks"].append({"res": res_entries,
                               "up": conv3_entry(blk["conv_up"], 1, B * L)})
    mask_keys.add((L, 1))
    plan["conv_mid"] = conv3_entry(params["conv_mid"], 1, B * L)
    plan["conv_out"] = conv3_entry(params["conv_out"], 1, B * L,
                                   cout_eff=out_pad)
    assert L == L_final
    w_slab = jnp.concatenate(w_blocks, axis=0)

    # ---- host-precomputed 0/1 masks: zero padding + batch-boundary guards ---
    mask_blocks, mask_off, cur = [], {}, 0
    for (Lm, d) in sorted(mask_keys):
        R = B * Lm
        r8 = _round_up(R, 8)
        pos = np.arange(R) % Lm
        for m in ((pos >= d), (pos < Lm - d)):               # lo, hi masks
            blockm = np.zeros((r8, mask_cols), np.float32)
            blockm[:R, :] = m.astype(np.float32)[:, None]
            mask_blocks.append(blockm)
        mask_off[(Lm, d)] = (cur, cur + r8)
        cur += 2 * r8
    plan["masks"] = mask_off
    m_slab = jnp.asarray(np.concatenate(mask_blocks, axis=0))

    # ---- host-precomputed nearest-x2 replication matrices (block-diagonal) --
    rep_cols = max(8, B * T * (2 ** max(down_t - 1, 0)))
    rep_blocks, rep_off, cur = [], {}, 0
    Lr = T
    for lvl in range(down_t):
        rows, cols = 2 * B * Lr, B * Lr
        rep = np.zeros((rows, cols), np.float32)
        for b in range(B):
            for m in range(2 * Lr):
                rep[b * 2 * Lr + m, b * Lr + m // 2] = 1.0
        r8 = _round_up(rows, 8)
        blockr = np.zeros((r8, rep_cols), np.float32)
        blockr[:rows, :cols] = rep
        rep_blocks.append(blockr)
        rep_off[lvl] = (cur, rows, cols)
        cur += r8
        Lr *= 2
    plan["reps"] = rep_off
    rep_slab = (jnp.asarray(np.concatenate(rep_blocks, axis=0)) if rep_blocks
                else jnp.zeros((8, rep_cols), jnp.float32))

    # ---- single fused pallas_call, whole batch in one grid step -------------
    R_final = B * L_final
    operands = (x_packed, w_slab, m_slab, rep_slab)
    bytes_accessed = sum(int(np.prod(a.shape)) * a.dtype.itemsize
                         for a in operands)
    bytes_accessed += R_final * out_pad * x_packed.dtype.itemsize

    y_pad = pl.pallas_call(
        functools.partial(_decoder_kernel, plan=plan, wdtype=wdtype),
        out_shape=jax.ShapeDtypeStruct((R_final, out_pad), x_ncl.dtype),
        grid=(1,),
        in_specs=[pl.BlockSpec(a.shape, lambda i: (0, 0)) for a in operands],
        out_specs=pl.BlockSpec((R_final, out_pad), lambda i: (0, 0)),
        compiler_params=pltpu.CompilerParams(
            dimension_semantics=("arbitrary",),
            vmem_limit_bytes=int(min(64 << 20,
                                     max(32 << 20, 4 * bytes_accessed)))),
        cost_estimate=pl.CostEstimate(flops=int(state["flops"]),
                                      transcendentals=0,
                                      bytes_accessed=int(bytes_accessed)),
    )(*operands)

    y = y_pad.reshape(B, L_final, out_pad)[:, :, :input_emb_width]
    return jnp.transpose(y, (0, 2, 1))                       # BLC -> NCL


# ----------------------------------------------------------------------------
# Pure-JAX reference (lax.conv_general_dilated) for correctness checking.
# ----------------------------------------------------------------------------
def _ref_conv1d(x_ncl, w, b, dilation=1):
    w_oik = jnp.transpose(w, (2, 1, 0))                      # (Cout, Cin, K)
    pad = dilation * (w.shape[0] // 2)
    y = jax.lax.conv_general_dilated(
        x_ncl, w_oik, window_strides=(1,), padding=[(pad, pad)],
        rhs_dilation=(dilation,), dimension_numbers=("NCH", "OIH", "NCH"))
    return y + b[None, :, None]


def ref_forward(params, x_ncl):
    x = jax.nn.relu(_ref_conv1d(x_ncl, *params["conv_in"]))
    for blk in params["blocks"]:
        for rb in blk["res"]:
            h = _ref_conv1d(jax.nn.relu(x), *rb["conv1"], dilation=rb["dilation"])
            h = _ref_conv1d(jax.nn.relu(h), *rb["conv2"])
            x = x + h
        x = jnp.repeat(x, 2, axis=2)
        x = _ref_conv1d(x, *blk["conv_up"])
    x = jax.nn.relu(_ref_conv1d(x, *params["conv_mid"]))
    return _ref_conv1d(x, *params["conv_out"])


if __name__ == "__main__":
    # Small config consistent with the module: Decoder_2(top=False,
    #   input_emb_width=3, output_emb_width=32, down_t=2, width=32, depth=2,
    #   dilation_growth_rate=3, activation='relu', norm=None)
    B, input_emb_width, output_emb_width = 2, 3, 32
    down_t, width, depth, rate, T = 2, 32, 2, 3, 8

    key = jax.random.PRNGKey(0)
    pkey, xkey = jax.random.split(key)
    params = init_params(pkey, input_emb_width, output_emb_width, down_t,
                         width, depth, rate)
    x = jax.random.normal(xkey, (B, output_emb_width, T), jnp.float32)  # NCL

    y = jax.block_until_ready(
        decoder2_forward(params, x, down_t=down_t, depth=depth, rate=rate,
                         input_emb_width=input_emb_width))
    assert y.shape == (B, input_emb_width, T * 2 ** down_t), y.shape

    y_ref = jax.block_until_ready(ref_forward(params, x))
    np.testing.assert_allclose(np.asarray(y), np.asarray(y_ref),
                               atol=2e-4, rtol=2e-4)
    print("KERNEL_OK")
</pallas_src>

<mosaic_0001>
module attributes {stable_mosaic.version = 11 : i64} {
  func.func @_decoder_kernel(%arg0: i32, %arg1: memref<16x32xf32, #tpu.memory_space<vmem>>, %arg2: memref<1096x128xf32, #tpu.memory_space<vmem>>, %arg3: memref<320x32xf32, #tpu.memory_space<vmem>>, %arg4: memref<96x32xf32, #tpu.memory_space<vmem>>, %arg5: memref<64x128xf32, #tpu.memory_space<vmem>>) attributes {dimension_semantics = [#tpu.dimension_semantics<arbitrary>], iteration_bounds = array<i64: 1>, scalar_prefetch = 0 : i64, scratch_operands = 0 : i64, tpu.core_type = #tpu.core_type<tc>, window_params = [{pipeline_mode = #tpu.pipeline_mode<synchronous>, transform_indices = @transform_0, window_bounds = array<i64: 16, 32>}, {pipeline_mode = #tpu.pipeline_mode<synchronous>, transform_indices = @transform_1, window_bounds = array<i64: 1096, 128>}, {pipeline_mode = #tpu.pipeline_mode<synchronous>, transform_indices = @transform_2, window_bounds = array<i64: 320, 32>}, {pipeline_mode = #tpu.pipeline_mode<synchronous>, transform_indices = @transform_3, window_bounds = array<i64: 96, 32>}, {pipeline_mode = #tpu.pipeline_mode<synchronous>, transform_indices = @transform_4, window_bounds = array<i64: 64, 128>}]} {
    %c0 = arith.constant 0 : index
    %c0_0 = arith.constant 0 : index
    %0 = vector.load %arg1[%c0, %c0_0] : memref<16x32xf32, #tpu.memory_space<vmem>>, vector<16x32xf32>
    %c1_i32 = arith.constant 1 : i32
    %1 = tpu.dynamic_rotate %0 by %c1_i32 dim 0 : vector<16x32xf32>, i32 -> vector<16x32xf32>
    %c0_1 = arith.constant 0 : index
    %c0_2 = arith.constant 0 : index
    %2 = vector.load %arg3[%c0_1, %c0_2] : memref<320x32xf32, #tpu.memory_space<vmem>>, vector<16x32xf32>
    %3 = arith.mulf %1, %2 : vector<16x32xf32>
    %c15_i32 = arith.constant 15 : i32
    %4 = tpu.dynamic_rotate %0 by %c15_i32 dim 0 : vector<16x32xf32>, i32 -> vector<16x32xf32>
    %c16 = arith.constant 16 : index
    %c0_3 = arith.constant 0 : index
    %5 = vector.load %arg3[%c16, %c0_3] : memref<320x32xf32, #tpu.memory_space<vmem>>, vector<16x32xf32>
    %6 = arith.mulf %4, %5 : vector<16x32xf32>
    %c0_4 = arith.constant 0 : index
    %c0_5 = arith.constant 0 : index
    %7 = vector.load %arg2[%c0_4, %c0_5] : memref<1096x128xf32, #tpu.memory_space<vmem>>, vector<32x32xf32>
    %cst = arith.constant dense<0.000000e+00> : vector<16x32xf32>
    %8 = tpu.matmul %3, %7, %cst {dimension_numbers = #tpu.dot_dimension_numbers<[1], [0], [0], [1], [0, 0, 1, 1], [], []>} : vector<16x32xf32>, vector<32x32xf32>, vector<16x32xf32> -> vector<16x32xf32>
    %c32 = arith.constant 32 : index
    %c0_6 = arith.constant 0 : index
    %9 = vector.load %arg2[%c32, %c0_6] : memref<1096x128xf32, #tpu.memory_space<vmem>>, vector<32x32xf32>
    %cst_7 = arith.constant dense<0.000000e+00> : vector<16x32xf32>
    %10 = tpu.matmul %0, %9, %cst_7 {dimension_numbers = #tpu.dot_dimension_numbers<[1], [0], [0], [1], [0, 0, 1, 1], [], []>} : vector<16x32xf32>, vector<32x32xf32>, vector<16x32xf32> -> vector<16x32xf32>
    %11 = arith.addf %8, %10 : vector<16x32xf32>
    %c64 = arith.constant 64 : index
    %c0_8 = arith.constant 0 : index
    %12 = vector.load %arg2[%c64, %c0_8] : memref<1096x128xf32, #tpu.memory_space<vmem>>, vector<32x32xf32>
    %cst_9 = arith.constant dense<0.000000e+00> : vector<16x32xf32>
    %13 = tpu.matmul %6, %12, %cst_9 {dimension_numbers = #tpu.dot_dimension_numbers<[1], [0], [0], [1], [0, 0, 1, 1], [], []>} : vector<16x32xf32>, vector<32x32xf32>, vector<16x32xf32> -> vector<16x32xf32>
    %14 = arith.addf %11, %13 : vector<16x32xf32>
    %c96 = arith.constant 96 : index
    %c0_10 = arith.constant 0 : index
    %15 = vector.load %arg2[%c96, %c0_10] : memref<1096x128xf32, #tpu.memory_space<vmem>>, vector<1x32xf32>
    %16 = vector.broadcast %15 : vector<1x32xf32> to vector<16x32xf32>
    %17 = arith.addf %14, %16 : vector<16x32xf32>
    %cst_11 = arith.constant 0.000000e+00 : f32
    %18 = vector.broadcast %cst_11 : f32 to vector<16x32xf32>
    %19 = arith.maximumf %17, %18 : vector<16x32xf32>
    %cst_12 = arith.constant 0.000000e+00 : f32
    %20 = vector.broadcast %cst_12 : f32 to vector<16x32xf32>
    %21 = arith.maximumf %19, %20 : vector<16x32xf32>
    %c3_i32 = arith.constant 3 : i32
    %22 = tpu.dynamic_rotate %21 by %c3_i32 dim 0 : vector<16x32xf32>, i32 -> vector<16x32xf32>
    %c32_13 = arith.constant 32 : index
    %c0_14 = arith.constant 0 : index
    %23 = vector.load %arg3[%c32_13, %c0_14] : memref<320x32xf32, #tpu.memory_space<vmem>>, vector<16x32xf32>
    %24 = arith.mulf %22, %23 : vector<16x32xf32>
    %c13_i32 = arith.constant 13 : i32
    %25 = tpu.dynamic_rotate %21 by %c13_i32 dim 0 : vector<16x32xf32>, i32 -> vector<16x32xf32>
    %c48 = arith.constant 48 : index
    %c0_15 = arith.constant 0 : index
    %26 = vector.load %arg3[%c48, %c0_15] : memref<320x32xf32, #tpu.memory_space<vmem>>, vector<16x32xf32>
    %27 = arith.mulf %25, %26 : vector<16x32xf32>
    %c104 = arith.constant 104 : index
    %c0_16 = arith.constant 0 : index
    %28 = vector.load %arg2[%c104, %c0_16] : memref<1096x128xf32, #tpu.memory_space<vmem>>, vector<32x32xf32>
    %cst_17 = arith.constant dense<0.000000e+00> : vector<16x32xf32>
    %29 = tpu.matmul %24, %28, %cst_17 {dimension_numbers = #tpu.dot_dimension_numbers<[1], [0], [0], [1], [0, 0, 1, 1], [], []>} : vector<16x32xf32>, vector<32x32xf32>, vector<16x32xf32> -> vector<16x32xf32>
    %c136 = arith.constant 136 : index
    %c0_18 = arith.constant 0 : index
    %30 = vector.load %arg2[%c136, %c0_18] : memref<1096x128xf32, #tpu.memory_space<vmem>>, vector<32x32xf32>
    %cst_19 = arith.constant dense<0.000000e+00> : vector<16x32xf32>
    %31 = tpu.matmul %21, %30, %cst_19 {dimension_numbers = #tpu.dot_dimension_numbers<[1], [0], [0], [1], [0, 0, 1, 1], [], []>} : vector<16x32xf32>, vector<32x32xf32>, vector<16x32xf32> -> vector<16x32xf32>
    %32 = arith.addf %29, %31 : vector<16x32xf32>
    %c168 = arith.constant 168 : index
    %c0_20 = arith.constant 0 : index
    %33 = vector.load %arg2[%c168, %c0_20] : memref<1096x128xf32, #tpu.memory_space<vmem>>, vector<32x32xf32>
    %cst_21 = arith.constant dense<0.000000e+00> : vector<16x32xf32>
    %34 = tpu.matmul %27, %33, %cst_21 {dimension_numbers = #tpu.dot_dimension_numbers<[1], [0], [0], [1], [0, 0, 1, 1], [], []>} : vector<16x32xf32>, vector<32x32xf32>, vector<16x32xf32> -> vector<16x32xf32>
    %35 = arith.addf %32, %34 : vector<16x32xf32>
    %c200 = arith.constant 200 : index
    %c0_22 = arith.constant 0 : index
    %36 = vector.load %arg2[%c200, %c0_22] : memref<1096x128xf32, #tpu.memory_space<vmem>>, vector<1x32xf32>
    %37 = vector.broadcast %36 : vector<1x32xf32> to vector<16x32xf32>
    %38 = arith.addf %35, %37 : vector<16x32xf32>
    %cst_23 = arith.constant 0.000000e+00 : f32
    %39 = vector.broadcast %cst_23 : f32 to vector<16x32xf32>
    %40 = arith.maximumf %38, %39 : vector<16x32xf32>
    %c208 = arith.constant 208 : index
    %c0_24 = arith.constant 0 : index
    %41 = vector.load %arg2[%c208, %c0_24] : memref<1096x128xf32, #tpu.memory_space<vmem>>, vector<32x32xf32>
    %cst_25 = arith.constant dense<0.000000e+00> : vector<16x32xf32>
    %42 = tpu.matmul %40, %41, %cst_25 {dimension_numbers = #tpu.dot_dimension_numbers<[1], [0], [0], [1], [0, 0, 1, 1], [], []>} : vector<16x32xf32>, vector<32x32xf32>, vector<16x32xf32> -> vector<16x32xf32>
    %c240 = arith.constant 240 : index
    %c0_26 = arith.constant 0 : index
    %43 = vector.load %arg2[%c240, %c0_26] : memref<1096x128xf32, #tpu.memory_space<vmem>>, vector<1x32xf32>
    %44 = vector.broadcast %43 : vector<1x32xf32> to vector<16x32xf32>
    %45 = arith.addf %42, %44 : vector<16x32xf32>
    %46 = arith.addf %19, %45 : vector<16x32xf32>
    %cst_27 = arith.constant 0.000000e+00 : f32
    %47 = vector.broadcast %cst_27 : f32 to vector<16x32xf32>
    %48 = arith.maximumf %46, %47 : vector<16x32xf32>
    %c1_i32_28 = arith.constant 1 : i32
    %49 = tpu.dynamic_rotate %48 by %c1_i32_28 dim 0 : vector<16x32xf32>, i32 -> vector<16x32xf32>
    %c0_29 = arith.constant 0 : index
    %c0_30 = arith.constant 0 : index
    %50 = vector.load %arg3[%c0_29, %c0_30] : memref<320x32xf32, #tpu.memory_space<vmem>>, vector<16x32xf32>
    %51 = arith.mulf %49, %50 : vector<16x32xf32>
    %c15_i32_31 = arith.constant 15 : i32
    %52 = tpu.dynamic_rotate %48 by %c15_i32_31 dim 0 : vector<16x32xf32>, i32 -> vector<16x32xf32>
    %c16_32 = arith.constant 16 : index
    %c0_33 = arith.constant 0 : index
    %53 = vector.load %arg3[%c16_32, %c0_33] : memref<320x32xf32, #tpu.memory_space<vmem>>, vector<16x32xf32>
    %54 = arith.mulf %52, %53 : vector<16x32xf32>
    %c248 = arith.constant 248 : index
    %c0_34 = arith.constant 0 : index
    %55 = vector.load %arg2[%c248, %c0_34] : memref<1096x128xf32, #tpu.memory_space<vmem>>, vector<32x32xf32>
    %cst_35 = arith.constant dense<0.000000e+00> : vector<16x32xf32>
    %56 = tpu.matmul %51, %55, %cst_35 {dimension_numbers = #tpu.dot_dimension_numbers<[1], [0], [0], [1], [0, 0, 1, 1], [], []>} : vector<16x32xf32>, vector<32x32xf32>, vector<16x32xf32> -> vector<16x32xf32>
    %c280 = arith.constant 280 : index
    %c0_36 = arith.constant 0 : index
    %57 = vector.load %arg2[%c280, %c0_36] : memref<1096x128xf32, #tpu.memory_space<vmem>>, vector<32x32xf32>
    %cst_37 = arith.constant dense<0.000000e+00> : vector<16x32xf32>
    %58 = tpu.matmul %48, %57, %cst_37 {dimension_numbers = #tpu.dot_dimension_numbers<[1], [0], [0], [1], [0, 0, 1, 1], [], []>} : vector<16x32xf32>, vector<32x32xf32>, vector<16x32xf32> -> vector<16x32xf32>
    %59 = arith.addf %56, %58 : vector<16x32xf32>
    %c312 = arith.constant 312 : index
    %c0_38 = arith.constant 0 : index
    %60 = vector.load %arg2[%c312, %c0_38] : memref<1096x128xf32, #tpu.memory_space<vmem>>, vector<32x32xf32>
    %cst_39 = arith.constant dense<0.000000e+00> : vector<16x32xf32>
    %61 = tpu.matmul %54, %60, %cst_39 {dimension_numbers = #tpu.dot_dimension_numbers<[1], [0], [0], [1], [0, 0, 1, 1], [], []>} : vector<16x32xf32>, vector<32x32xf32>, vector<16x32xf32> -> vector<16x32xf32>
    %62 = arith.addf %59, %61 : vector<16x32xf32>
    %c344 = arith.constant 344 : index
    %c0_40 = arith.constant 0 : index
    %63 = vector.load %arg2[%c344, %c0_40] : memref<1096x128xf32, #tpu.memory_space<vmem>>, vector<1x32xf32>
    %64 = vector.broadcast %63 : vector<1x32xf32> to vector<16x32xf32>
    %65 = arith.addf %62, %64 : vector<16x32xf32>
    %cst_41 = arith.constant 0.000000e+00 : f32
    %66 = vector.broadcast %cst_41 : f32 to vector<16x32xf32>
    %67 = arith.maximumf %65, %66 : vector<16x32xf32>
    %c352 = arith.constant 352 : index
    %c0_42 = arith.constant 0 : index
    %68 = vector.load %arg2[%c352, %c0_42] : memref<1096x128xf32, #tpu.memory_space<vmem>>, vector<32x32xf32>
    %cst_43 = arith.constant dense<0.000000e+00> : vector<16x32xf32>
    %69 = tpu.matmul %67, %68, %cst_43 {dimension_numbers = #tpu.dot_dimension_numbers<[1], [0], [0], [1], [0, 0, 1, 1], [], []>} : vector<16x32xf32>, vector<32x32xf32>, vector<16x32xf32> -> vector<16x32xf32>
    %c384 = arith.constant 384 : index
    %c0_44 = arith.constant 0 : index
    %70 = vector.load %arg2[%c384, %c0_44] : memref<1096x128xf32, #tpu.memory_space<vmem>>, vector<1x32xf32>
    %71 = vector.broadcast %70 : vector<1x32xf32> to vector<16x32xf32>
    %72 = arith.addf %69, %71 : vector<16x32xf32>
    %73 = arith.addf %46, %72 : vector<16x32xf32>
    %c0_45 = arith.constant 0 : index
    %c0_46 = arith.constant 0 : index
    %74 = vector.load %arg4[%c0_45, %c0_46] : memref<96x32xf32, #tpu.memory_space<vmem>>, vector<32x16xf32>
    %cst_47 = arith.constant dense<0.000000e+00> : vector<32x32xf32>
    %75 = tpu.matmul %74, %73, %cst_47 {dimension_numbers = #tpu.dot_dimension_numbers<[1], [0], [0], [1], [0, 0, 1, 1], [], []>} : vector<32x16xf32>, vector<16x32xf32>, vector<32x32xf32> -> vector<32x32xf32>
    %c1_i32_48 = arith.constant 1 : i32
    %76 = tpu.dynamic_rotate %75 by %c1_i32_48 dim 0 : vector<32x32xf32>, i32 -> vector<32x32xf32>
    %c64_49 = arith.constant 64 : index
    %c0_50 = arith.constant 0 : index
    %77 = vector.load %arg3[%c64_49, %c0_50] : memref<320x32xf32, #tpu.memory_space<vmem>>, vector<32x32xf32>
    %78 = arith.mulf %76, %77 : vector<32x32xf32>
    %c31_i32 = arith.constant 31 : i32
    %79 = tpu.dynamic_rotate %75 by %c31_i32 dim 0 : vector<32x32xf32>, i32 -> vector<32x32xf32>
    %c96_51 = arith.constant 96 : index
    %c0_52 = arith.constant 0 : index
    %80 = vector.load %arg3[%c96_51, %c0_52] : memref<320x32xf32, #tpu.memory_space<vmem>>, vector<32x32xf32>
    %81 = arith.mulf %79, %80 : vector<32x32xf32>
    %c392 = arith.constant 392 : index
    %c0_53 = arith.constant 0 : index
    %82 = vector.load %arg2[%c392, %c0_53] : memref<1096x128xf32, #tpu.memory_space<vmem>>, vector<32x32xf32>
    %cst_54 = arith.constant dense<0.000000e+00> : vector<32x32xf32>
    %83 = tpu.matmul %78, %82, %cst_54 {dimension_numbers = #tpu.dot_dimension_numbers<[1], [0], [0], [1], [0, 0, 1, 1], [], []>} : vector<32x32xf32>, vector<32x32xf32>, vector<32x32xf32> -> vector<32x32xf32>
    %c424 = arith.constant 424 : index
    %c0_55 = arith.constant 0 : index
    %84 = vector.load %arg2[%c424, %c0_55] : memref<1096x128xf32, #tpu.memory_space<vmem>>, vector<32x32xf32>
    %cst_56 = arith.constant dense<0.000000e+00> : vector<32x32xf32>
    %85 = tpu.matmul %75, %84, %cst_56 {dimension_numbers = #tpu.dot_dimension_numbers<[1], [0], [0], [1], [0, 0, 1, 1], [], []>} : vector<32x32xf32>, vector<32x32xf32>, vector<32x32xf32> -> vector<32x32xf32>
    %86 = arith.addf %83, %85 : vector<32x32xf32>
    %c456 = arith.constant 456 : index
    %c0_57 = arith.constant 0 : index
    %87 = vector.load %arg2[%c456, %c0_57] : memref<1096x128xf32, #tpu.memory_space<vmem>>, vector<32x32xf32>
    %cst_58 = arith.constant dense<0.000000e+00> : vector<32x32xf32>
    %88 = tpu.matmul %81, %87, %cst_58 {dimension_numbers = #tpu.dot_dimension_numbers<[1], [0], [0], [1], [0, 0, 1, 1], [], []>} : vector<32x32xf32>, vector<32x32xf32>, vector<32x32xf32> -> vector<32x32xf32>
    %89 = arith.addf %86, %88 : vector<32x32xf32>
    %c488 = arith.constant 488 : index
    %c0_59 = arith.constant 0 : index
    %90 = vector.load %arg2[%c488, %c0_59] : memref<1096x128xf32, #tpu.memory_space<vmem>>, vector<1x32xf32>
    %91 = vector.broadcast %90 : vector<1x32xf32> to vector<32x32xf32>
    %92 = arith.addf %89, %91 : vector<32x32xf32>
    %cst_60 = arith.constant 0.000000e+00 : f32
    %93 = vector.broadcast %cst_60 : f32 to vector<32x32xf32>
    %94 = arith.maximumf %92, %93 : vector<32x32xf32>
    %c3_i32_61 = arith.constant 3 : i32
    %95 = tpu.dynamic_rotate %94 by %c3_i32_61 dim 0 : vector<32x32xf32>, i32 -> vector<32x32xf32>
    %c128 = arith.constant 128 : index
    %c0_62 = arith.constant 0 : index
    %96 = vector.load %arg3[%c128, %c0_62] : memref<320x32xf32, #tpu.memory_space<vmem>>, vector<32x32xf32>
    %97 = arith.mulf %95, %96 : vector<32x32xf32>
    %c29_i32 = arith.constant 29 : i32
    %98 = tpu.dynamic_rotate %94 by %c29_i32 dim 0 : vector<32x32xf32>, i32 -> vector<32x32xf32>
    %c160 = arith.constant 160 : index
    %c0_63 = arith.constant 0 : index
    %99 = vector.load %arg3[%c160, %c0_63] : memref<320x32xf32, #tpu.memory_space<vmem>>, vector<32x32xf32>
    %100 = arith.mulf %98, %99 : vector<32x32xf32>
    %c496 = arith.constant 496 : index
    %c0_64 = arith.constant 0 : index
    %101 = vector.load %arg2[%c496, %c0_64] : memref<1096x128xf32, #tpu.memory_space<vmem>>, vector<32x32xf32>
    %cst_65 = arith.constant dense<0.000000e+00> : vector<32x32xf32>
    %102 = tpu.matmul %97, %101, %cst_65 {dimension_numbers = #tpu.dot_dimension_numbers<[1], [0], [0], [1], [0, 0, 1, 1], [], []>} : vector<32x32xf32>, vector<32x32xf32>, vector<32x32xf32> -> vector<32x32xf32>
    %c528 = arith.constant 528 : index
    %c0_66 = arith.constant 0 : index
    %103 = vector.load %arg2[%c528, %c0_66] : memref<1096x128xf32, #tpu.memory_space<vmem>>, vector<32x32xf32>
    %cst_67 = arith.constant dense<0.000000e+00> : vector<32x32xf32>
    %104 = tpu.matmul %94, %103, %cst_67 {dimension_numbers = #tpu.dot_dimension_numbers<[1], [0], [0], [1], [0, 0, 1, 1], [], []>} : vector<32x32xf32>, vector<32x32xf32>, vector<32x32xf32> -> vector<32x32xf32>
    %105 = arith.addf %102, %104 : vector<32x32xf32>
    %c560 = arith.constant 560 : index
    %c0_68 = arith.constant 0 : index
    %106 = vector.load %arg2[%c560, %c0_68] : memref<1096x128xf32, #tpu.memory_space<vmem>>, vector<32x32xf32>
    %cst_69 = arith.constant dense<0.000000e+00> : vector<32x32xf32>
    %107 = tpu.matmul %100, %106, %cst_69 {dimension_numbers = #tpu.dot_dimension_numbers<[1], [0], [0], [1], [0, 0, 1, 1], [], []>} : vector<32x32xf32>, vector<32x32xf32>, vector<32x32xf32> -> vector<32x32xf32>
    %108 = arith.addf %105, %107 : vector<32x32xf32>
    %c592 = arith.constant 592 : index
    %c0_70 = arith.constant 0 : index
    %109 = vector.load %arg2[%c592, %c0_70] : memref<1096x128xf32, #tpu.memory_space<vmem>>, vector<1x32xf32>
    %110 = vector.broadcast %109 : vector<1x32xf32> to vector<32x32xf32>
    %111 = arith.addf %108, %110 : vector<32x32xf32>
    %cst_71 = arith.constant 0.000000e+00 : f32
    %112 = vector.broadcast %cst_71 : f32 to vector<32x32xf32>
    %113 = arith.maximumf %111, %112 : vector<32x32xf32>
    %c600 = arith.constant 600 : index
    %c0_72 = arith.constant 0 : index
    %114 = vector.load %arg2[%c600, %c0_72] : memref<1096x128xf32, #tpu.memory_space<vmem>>, vector<32x32xf32>
    %cst_73 = arith.constant dense<0.000000e+00> : vector<32x32xf32>
    %115 = tpu.matmul %113, %114, %cst_73 {dimension_numbers = #tpu.dot_dimension_numbers<[1], [0], [0], [1], [0, 0, 1, 1], [], []>} : vector<32x32xf32>, vector<32x32xf32>, vector<32x32xf32> -> vector<32x32xf32>
    %c632 = arith.constant 632 : index
    %c0_74 = arith.constant 0 : index
    %116 = vector.load %arg2[%c632, %c0_74] : memref<1096x128xf32, #tpu.memory_space<vmem>>, vector<1x32xf32>
    %117 = vector.broadcast %116 : vector<1x32xf32> to vector<32x32xf32>
    %118 = arith.addf %115, %117 : vector<32x32xf32>
    %119 = arith.addf %92, %118 : vector<32x32xf32>
    %cst_75 = arith.constant 0.000000e+00 : f32
    %120 = vector.broadcast %cst_75 : f32 to vector<32x32xf32>
    %121 = arith.maximumf %119, %120 : vector<32x32xf32>
    %c1_i32_76 = arith.constant 1 : i32
    %122 = tpu.dynamic_rotate %121 by %c1_i32_76 dim 0 : vector<32x32xf32>, i32 -> vector<32x32xf32>
    %c64_77 = arith.constant 64 : index
    %c0_78 = arith.constant 0 : index
    %123 = vector.load %arg3[%c64_77, %c0_78] : memref<320x32xf32, #tpu.memory_space<vmem>>, vector<32x32xf32>
    %124 = arith.mulf %122, %123 : vector<32x32xf32>
    %c31_i32_79 = arith.constant 31 : i32
    %125 = tpu.dynamic_rotate %121 by %c31_i32_79 dim 0 : vector<32x32xf32>, i32 -> vector<32x32xf32>
    %c96_80 = arith.constant 96 : index
    %c0_81 = arith.constant 0 : index
    %126 = vector.load %arg3[%c96_80, %c0_81] : memref<320x32xf32, #tpu.memory_space<vmem>>, vector<32x32xf32>
    %127 = arith.mulf %125, %126 : vector<32x32xf32>
    %c640 = arith.constant 640 : index
    %c0_82 = arith.constant 0 : index
    %128 = vector.load %arg2[%c640, %c0_82] : memref<1096x128xf32, #tpu.memory_space<vmem>>, vector<32x32xf32>
    %cst_83 = arith.constant dense<0.000000e+00> : vector<32x32xf32>
    %129 = tpu.matmul %124, %128, %cst_83 {dimension_numbers = #tpu.dot_dimension_numbers<[1], [0], [0], [1], [0, 0, 1, 1], [], []>} : vector<32x32xf32>, vector<32x32xf32>, vector<32x32xf32> -> vector<32x32xf32>
    %c672 = arith.constant 672 : index
    %c0_84 = arith.constant 0 : index
    %130 = vector.load %arg2[%c672, %c0_84] : memref<1096x128xf32, #tpu.memory_space<vmem>>, vector<32x32xf32>
    %cst_85 = arith.constant dense<0.000000e+00> : vector<32x32xf32>
    %131 = tpu.matmul %121, %130, %cst_85 {dimension_numbers = #tpu.dot_dimension_numbers<[1], [0], [0], [1], [0, 0, 1, 1], [], []>} : vector<32x32xf32>, vector<32x32xf32>, vector<32x32xf32> -> vector<32x32xf32>
    %132 = arith.addf %129, %131 : vector<32x32xf32>
    %c704 = arith.constant 704 : index
    %c0_86 = arith.constant 0 : index
    %133 = vector.load %arg2[%c704, %c0_86] : memref<1096x128xf32, #tpu.memory_space<vmem>>, vector<32x32xf32>
    %cst_87 = arith.constant dense<0.000000e+00> : vector<32x32xf32>
    %134 = tpu.matmul %127, %133, %cst_87 {dimension_numbers = #tpu.dot_dimension_numbers<[1], [0], [0], [1], [0, 0, 1, 1], [], []>} : vector<32x32xf32>, vector<32x32xf32>, vector<32x32xf32> -> vector<32x32xf32>
    %135 = arith.addf %132, %134 : vector<32x32xf32>
    %c736 = arith.constant 736 : index
    %c0_88 = arith.constant 0 : index
    %136 = vector.load %arg2[%c736, %c0_88] : memref<1096x128xf32, #tpu.memory_space<vmem>>, vector<1x32xf32>
    %137 = vector.broadcast %136 : vector<1x32xf32> to vector<32x32xf32>
    %138 = arith.addf %135, %137 : vector<32x32xf32>
    %cst_89 = arith.constant 0.000000e+00 : f32
    %139 = vector.broadcast %cst_89 : f32 to vector<32x32xf32>
    %140 = arith.maximumf %138, %139 : vector<32x32xf32>
    %c744 = arith.constant 744 : index
    %c0_90 = arith.constant 0 : index
    %141 = vector.load %arg2[%c744, %c0_90] : memref<1096x128xf32, #tpu.memory_space<vmem>>, vector<32x32xf32>
    %cst_91 = arith.constant dense<0.000000e+00> : vector<32x32xf32>
    %142 = tpu.matmul %140, %141, %cst_91 {dimension_numbers = #tpu.dot_dimension_numbers<[1], [0], [0], [1], [0, 0, 1, 1], [], []>} : vector<32x32xf32>, vector<32x32xf32>, vector<32x32xf32> -> vector<32x32xf32>
    %c776 = arith.constant 776 : index
    %c0_92 = arith.constant 0 : index
    %143 = vector.load %arg2[%c776, %c0_92] : memref<1096x128xf32, #tpu.memory_space<vmem>>, vector<1x32xf32>
    %144 = vector.broadcast %143 : vector<1x32xf32> to vector<32x32xf32>
    %145 = arith.addf %142, %144 : vector<32x32xf32>
    %146 = arith.addf %119, %145 : vector<32x32xf32>
    %c32_93 = arith.constant 32 : index
    %c0_94 = arith.constant 0 : index
    %147 = vector.load %arg4[%c32_93, %c0_94] : memref<96x32xf32, #tpu.memory_space<vmem>>, vector<64x32xf32>
    %cst_95 = arith.constant dense<0.000000e+00> : vector<64x32xf32>
    %148 = tpu.matmul %147, %146, %cst_95 {dimension_numbers = #tpu.dot_dimension_numbers<[1], [0], [0], [1], [0, 0, 1, 1], [], []>} : vector<64x32xf32>, vector<32x32xf32>, vector<64x32xf32> -> vector<64x32xf32>
    %c1_i32_96 = arith.constant 1 : i32
    %149 = tpu.dynamic_rotate %148 by %c1_i32_96 dim 0 : vector<64x32xf32>, i32 -> vector<64x32xf32>
    %c192 = arith.constant 192 : index
    %c0_97 = arith.constant 0 : index
    %150 = vector.load %arg3[%c192, %c0_97] : memref<320x32xf32, #tpu.memory_space<vmem>>, vector<64x32xf32>
    %151 = arith.mulf %149, %150 : vector<64x32xf32>
    %c63_i32 = arith.constant 63 : i32
    %152 = tpu.dynamic_rotate %148 by %c63_i32 dim 0 : vector<64x32xf32>, i32 -> vector<64x32xf32>
    %c256 = arith.constant 256 : index
    %c0_98 = arith.constant 0 : index
    %153 = vector.load %arg3[%c256, %c0_98] : memref<320x32xf32, #tpu.memory_space<vmem>>, vector<64x32xf32>
    %154 = arith.mulf %152, %153 : vector<64x32xf32>
    %c784 = arith.constant 784 : index
    %c0_99 = arith.constant 0 : index
    %155 = vector.load %arg2[%c784, %c0_99] : memref<1096x128xf32, #tpu.memory_space<vmem>>, vector<32x32xf32>
    %cst_100 = arith.constant dense<0.000000e+00> : vector<64x32xf32>
    %156 = tpu.matmul %151, %155, %cst_100 {dimension_numbers = #tpu.dot_dimension_numbers<[1], [0], [0], [1], [0, 0, 1, 1], [], []>} : vector<64x32xf32>, vector<32x32xf32>, vector<64x32xf32> -> vector<64x32xf32>
    %c816 = arith.constant 816 : index
    %c0_101 = arith.constant 0 : index
    %157 = vector.load %arg2[%c816, %c0_101] : memref<1096x128xf32, #tpu.memory_space<vmem>>, vector<32x32xf32>
    %cst_102 = arith.constant dense<0.000000e+00> : vector<64x32xf32>
    %158 = tpu.matmul %148, %157, %cst_102 {dimension_numbers = #tpu.dot_dimension_numbers<[1], [0], [0], [1], [0, 0, 1, 1], [], []>} : vector<64x32xf32>, vector<32x32xf32>, vector<64x32xf32> -> vector<64x32xf32>
    %159 = arith.addf %156, %158 : vector<64x32xf32>
    %c848 = arith.constant 848 : index
    %c0_103 = arith.constant 0 : index
    %160 = vector.load %arg2[%c848, %c0_103] : memref<1096x128xf32, #tpu.memory_space<vmem>>, vector<32x32xf32>
    %cst_104 = arith.constant dense<0.000000e+00> : vector<64x32xf32>
    %161 = tpu.matmul %154, %160, %cst_104 {dimension_numbers = #tpu.dot_dimension_numbers<[1], [0], [0], [1], [0, 0, 1, 1], [], []>} : vector<64x32xf32>, vector<32x32xf32>, vector<64x32xf32> -> vector<64x32xf32>
    %162 = arith.addf %159, %161 : vector<64x32xf32>
    %c880 = arith.constant 880 : index
    %c0_105 = arith.constant 0 : index
    %163 = vector.load %arg2[%c880, %c0_105] : memref<1096x128xf32, #tpu.memory_space<vmem>>, vector<1x32xf32>
    %164 = vector.broadcast %163 : vector<1x32xf32> to vector<64x32xf32>
    %165 = arith.addf %162, %164 : vector<64x32xf32>
    %c1_i32_106 = arith.constant 1 : i32
    %166 = tpu.dynamic_rotate %165 by %c1_i32_106 dim 0 : vector<64x32xf32>, i32 -> vector<64x32xf32>
    %c192_107 = arith.constant 192 : index
    %c0_108 = arith.constant 0 : index
    %167 = vector.load %arg3[%c192_107, %c0_108] : memref<320x32xf32, #tpu.memory_space<vmem>>, vector<64x32xf32>
    %168 = arith.mulf %166, %167 : vector<64x32xf32>
    %c63_i32_109 = arith.constant 63 : i32
    %169 = tpu.dynamic_rotate %165 by %c63_i32_109 dim 0 : vector<64x32xf32>, i32 -> vector<64x32xf32>
    %c256_110 = arith.constant 256 : index
    %c0_111 = arith.constant 0 : index
    %170 = vector.load %arg3[%c256_110, %c0_111] : memref<320x32xf32, #tpu.memory_space<vmem>>, vector<64x32xf32>
    %171 = arith.mulf %169, %170 : vector<64x32xf32>
    %c888 = arith.constant 888 : index
    %c0_112 = arith.constant 0 : index
    %172 = vector.load %arg2[%c888, %c0_112] : memref<1096x128xf32, #tpu.memory_space<vmem>>, vector<32x32xf32>
    %cst_113 = arith.constant dense<0.000000e+00> : vector<64x32xf32>
    %173 = tpu.matmul %168, %172, %cst_113 {dimension_numbers = #tpu.dot_dimension_numbers<[1], [0], [0], [1], [0, 0, 1, 1], [], []>} : vector<64x32xf32>, vector<32x32xf32>, vector<64x32xf32> -> vector<64x32xf32>
    %c920 = arith.constant 920 : index
    %c0_114 = arith.constant 0 : index
    %174 = vector.load %arg2[%c920, %c0_114] : memref<1096x128xf32, #tpu.memory_space<vmem>>, vector<32x32xf32>
    %cst_115 = arith.constant dense<0.000000e+00> : vector<64x32xf32>
    %175 = tpu.matmul %165, %174, %cst_115 {dimension_numbers = #tpu.dot_dimension_numbers<[1], [0], [0], [1], [0, 0, 1, 1], [], []>} : vector<64x32xf32>, vector<32x32xf32>, vector<64x32xf32> -> vector<64x32xf32>
    %176 = arith.addf %173, %175 : vector<64x32xf32>
    %c952 = arith.constant 952 : index
    %c0_116 = arith.constant 0 : index
    %177 = vector.load %arg2[%c952, %c0_116] : memref<1096x128xf32, #tpu.memory_space<vmem>>, vector<32x32xf32>
    %cst_117 = arith.constant dense<0.000000e+00> : vector<64x32xf32>
    %178 = tpu.matmul %171, %177, %cst_117 {dimension_numbers = #tpu.dot_dimension_numbers<[1], [0], [0], [1], [0, 0, 1, 1], [], []>} : vector<64x32xf32>, vector<32x32xf32>, vector<64x32xf32> -> vector<64x32xf32>
    %179 = arith.addf %176, %178 : vector<64x32xf32>
    %c984 = arith.constant 984 : index
    %c0_118 = arith.constant 0 : index
    %180 = vector.load %arg2[%c984, %c0_118] : memref<1096x128xf32, #tpu.memory_space<vmem>>, vector<1x32xf32>
    %181 = vector.broadcast %180 : vector<1x32xf32> to vector<64x32xf32>
    %182 = arith.addf %179, %181 : vector<64x32xf32>
    %cst_119 = arith.constant 0.000000e+00 : f32
    %183 = vector.broadcast %cst_119 : f32 to vector<64x32xf32>
    %184 = arith.maximumf %182, %183 : vector<64x32xf32>
    %c1_i32_120 = arith.constant 1 : i32
    %185 = tpu.dynamic_rotate %184 by %c1_i32_120 dim 0 : vector<64x32xf32>, i32 -> vector<64x32xf32>
    %c192_121 = arith.constant 192 : index
    %c0_122 = arith.constant 0 : index
    %186 = vector.load %arg3[%c192_121, %c0_122] : memref<320x32xf32, #tpu.memory_space<vmem>>, vector<64x32xf32>
    %187 = arith.mulf %185, %186 : vector<64x32xf32>
    %c63_i32_123 = arith.constant 63 : i32
    %188 = tpu.dynamic_rotate %184 by %c63_i32_123 dim 0 : vector<64x32xf32>, i32 -> vector<64x32xf32>
    %c256_124 = arith.constant 256 : index
    %c0_125 = arith.constant 0 : index
    %189 = vector.load %arg3[%c256_124, %c0_125] : memref<320x32xf32, #tpu.memory_space<vmem>>, vector<64x32xf32>
    %190 = arith.mulf %188, %189 : vector<64x32xf32>
    %c992 = arith.constant 992 : index
    %c0_126 = arith.constant 0 : index
    %191 = vector.load %arg2[%c992, %c0_126] : memref<1096x128xf32, #tpu.memory_space<vmem>>, vector<32x128xf32>
    %cst_127 = arith.constant dense<0.000000e+00> : vector<64x128xf32>
    %192 = tpu.matmul %187, %191, %cst_127 {dimension_numbers = #tpu.dot_dimension_numbers<[1], [0], [0], [1], [0, 0, 1, 1], [], []>} : vector<64x32xf32>, vector<32x128xf32>, vector<64x128xf32> -> vector<64x128xf32>
    %c1024 = arith.constant 1024 : index
    %c0_128 = arith.constant 0 : index
    %193 = vector.load %arg2[%c1024, %c0_128] : memref<1096x128xf32, #tpu.memory_space<vmem>>, vector<32x128xf32>
    %cst_129 = arith.constant dense<0.000000e+00> : vector<64x128xf32>
    %194 = tpu.matmul %184, %193, %cst_129 {dimension_numbers = #tpu.dot_dimension_numbers<[1], [0], [0], [1], [0, 0, 1, 1], [], []>} : vector<64x32xf32>, vector<32x128xf32>, vector<64x128xf32> -> vector<64x128xf32>
    %195 = arith.addf %192, %194 : vector<64x128xf32>
    %c1056 = arith.constant 1056 : index
    %c0_130 = arith.constant 0 : index
    %196 = vector.load %arg2[%c1056, %c0_130] : memref<1096x128xf32, #tpu.memory_space<vmem>>, vector<32x128xf32>
    %cst_131 = arith.constant dense<0.000000e+00> : vector<64x128xf32>
    %197 = tpu.matmul %190, %196, %cst_131 {dimension_numbers = #tpu.dot_dimension_numbers<[1], [0], [0], [1], [0, 0, 1, 1], [], []>} : vector<64x32xf32>, vector<32x128xf32>, vector<64x128xf32> -> vector<64x128xf32>
    %198 = arith.addf %195, %197 : vector<64x128xf32>
    %c1088 = arith.constant 1088 : index
    %c0_132 = arith.constant 0 : index
    %199 = vector.load %arg2[%c1088, %c0_132] : memref<1096x128xf32, #tpu.memory_space<vmem>>, vector<1x128xf32>
    %200 = vector.broadcast %199 : vector<1x128xf32> to vector<64x128xf32>
    %201 = arith.addf %198, %200 : vector<64x128xf32>
    %c0_133 = arith.constant 0 : index
    %c0_134 = arith.constant 0 : index
    %202 = vector.load %arg5[%c0_133, %c0_134] : memref<64x128xf32, #tpu.memory_space<vmem>>, vector<64x128xf32>
    tpu.vector_store %arg5[%c0_133, %c0_134], %201 {strides = array<i32>} : memref<64x128xf32, #tpu.memory_space<vmem>>, vector<64x128xf32>,
    return
  }
  func.func @transform_0(%arg0: i32) -> (i32, i32) {
    %c0_i32 = arith.constant 0 : i32
    %c0_i32_0 = arith.constant 0 : i32
    %c0_i32_1 = arith.constant 0 : i32
    return %c0_i32, %c0_i32_0 : i32, i32
  }
  func.func @transform_1(%arg0: i32) -> (i32, i32) {
    %c0_i32 = arith.constant 0 : i32
    %c0_i32_0 = arith.constant 0 : i32
    %c0_i32_1 = arith.constant 0 : i32
    return %c0_i32, %c0_i32_0 : i32, i32
  }
  func.func @transform_2(%arg0: i32) -> (i32, i32) {
    %c0_i32 = arith.constant 0 : i32
    %c0_i32_0 = arith.constant 0 : i32
    %c0_i32_1 = arith.constant 0 : i32
    return %c0_i32, %c0_i32_0 : i32, i32
  }
  func.func @transform_3(%arg0: i32) -> (i32, i32) {
    %c0_i32 = arith.constant 0 : i32
    %c0_i32_0 = arith.constant 0 : i32
    %c0_i32_1 = arith.constant 0 : i32
    return %c0_i32, %c0_i32_0 : i32, i32
  }
  func.func @transform_4(%arg0: i32) -> (i32, i32) {
    %c0_i32 = arith.constant 0 : i32
    %c0_i32_0 = arith.constant 0 : i32
    %c0_i32_1 = arith.constant 0 : i32
    return %c0_i32, %c0_i32_0 : i32, i32
  }
}

</mosaic_0001>

<bundles_post_ra>
// kernel: decoder2_forward.1
= control target key start
LH: loop header
LB: loop body
LE: loop exit
PB: predicated region body
PF: predicated region fallthrough
CT: control target
= control target key end

     0   :  { %v21_v0 = vlaneseq  ;;  %vm47_vm2 = vcmask 261120   ;;  %vm473_vm5 = vcmask 130048   ;;  %s3467_s1 = inlined_call_operand.vmem [shape: f32[1096,128], index: 1, kind: input, shape index: {}]   ;;  %s3468_s0 = inlined_call_operand.vmem [shape: f32[16,32], index: 0, kind: input, shape index: {}]   ;;  %s3469_s2 = inlined_call_operand.vmem [shape: f32[320,32], index: 2, kind: input, shape index: {}]   ;;  %s3470_s3 = inlined_call_operand.vmem [shape: f32[96,32], index: 3, kind: input, shape index: {}]   ;;  %s3471_s4 = inlined_call_operand.vmem [shape: f32[64,128], index: 4, kind: output, shape index: {}]  }
   0x1   :  { %v109_v1 = vld [vmem:[%s3467_s1 + $0x58] sm:$0xff]  ;;  %v108_v2 = vld [vmem:[%s3467_s1 + $0x50] sm:$0xff]  ;;  %v107_v7 = vld [vmem:[%s3467_s1 + $0x48] sm:$0xff] }
   0x2   :  { %v46_v3 = vld [vmem:[%s3467_s1 + $0x38] sm:$0xff]  ;;  %128 = vmatpush.msra.mxu2 %v109_v1  ;;  %v45_v5 = vld [vmem:[%s3467_s1 + $0x30] sm:$0xff]  ;;  %v2289_v6 = vshrl.u32 %v21_v0, 7  ;;  %v17_v9 = vld [vmem:[%s3468_s0] sm:$0xff] }
   0x3   :  { %66 = vmatpush.msra.mxu0 %v46_v3  ;;  %v42_v4 = vld [vmem:[%s3467_s1 + $0x18] sm:$0xff]  ;;  %v41_v8 = vld [vmem:[%s3467_s1 + $0x10] sm:$0xff]  ;;  %v106_v10 = vld [vmem:[%s3467_s1 + $0x40] sm:$0xff]  ;;  %v30_v12 = vrot.slane %v17_v9, 1  ;;  %v19_v14 = vrot.slane %v17_v9, 7 }
   0x4   :  { %95 = vmatpush.msra.mxu1 %v42_v4  ;;  %129 = vmatpush.msra.mxu2 %v108_v2  ;;  %v18_v11 = vld [vmem:[%s3468_s0 + $0x8] sm:$0xff]  ;;  %vm32_vm0 = vcmp.lt.s32.totalorder %v2289_v6, 7  ;;  %v2313_v16 = vld [vmem:[%s3469_s2 + $0x10] sm:$0xff]  ;;  %v43_v18 = vld [vmem:[%s3467_s1 + $0x20] sm:$0xff]  ;;  %vm23_vm1 = vcmp.lt.s32.totalorder %v2289_v6, 1  ;;  %vm151_vm3 = vcmp.lt.s32.totalorder %v2289_v6, 3 }
   0x5   :  { %67 = vmatpush.msra.mxu0 %v45_v5  ;;  %v44_v13 = vld [vmem:[%s3467_s1 + $0x28] sm:$0xff]  ;;  %v31_v15 = vrot.slane %v18_v11, 1  ;;  %v20_v19 = vrot.slane %v18_v11, 7  ;;  %v39_v20 = vld [vmem:[%s3467_s1] sm:$0xff]  ;;  %v2344_v27 = vld [vmem:[%s3469_s2 + $0x18] sm:$0xff]  ;;  %vm160_vm4 = vcmp.lt.s32.totalorder %v2289_v6, 5 }
   0x6   :  { %96 = vmatpush.msra.mxu1 %v41_v8  ;;  %v40_v17 = vld [vmem:[%s3467_s1 + $0x8] sm:$0xff]  ;;  %130 = vmatpush.msra.mxu2 %v107_v7  ;;  %v2328_v21 = vld [vmem:[%s3469_s2] sm:$0xff]  ;;  %v173_v33 = vld [vmem:[%s3467_s1 + $0x98] sm:$0xff] }
   0x7   :  { %68 = vmatpush.msra.mxu0 %v44_v13  ;;  %v33_v22 = vsel %vm32_vm0, %v30_v12, %v31_v15  ;;  %v25_v23 = vsel %vm23_vm1, %v20_v19, %v19_v14  ;;  %v34_v26 = vsel %vm32_vm0, %v31_v15, %v30_v12  ;;  %v24_v28 = vsel %vm23_vm1, %v19_v14, %v20_v19  ;;  %v2351_v29 = vld [vmem:[%s3469_s2 + $0x8] sm:$0xff]  ;;  %v174_v32 = vld [vmem:[%s3467_s1 + $0xa0] sm:$0xff]  ;;  %v172_v34 = vld [vmem:[%s3467_s1 + $0x90] sm:$0xff] }
   0x8   :  { %97 = vmatpush.msra.mxu1 %v40_v17  ;;  %131 = vmatpush.msra.mxu2 %v106_v10  ;;  %v37_v24 = vmul.f32 %v2313_v16, %v33_v22  ;;  %v28_v25 = vmul.f32 %v2328_v21, %v25_v23  ;;  %v38_v30 = vmul.f32 %v2344_v27, %v34_v26  ;;  %v171_v35 = vld [vmem:[%s3467_s1 + $0x88] sm:$0xff]  ;;  %v170_v36 = vld [vmem:[%s3467_s1 + $0x80] sm:$0xff]  ;;  %v169_v38 = vld [vmem:[%s3467_s1 + $0x78] sm:$0xff] }
   0x9   :  { %69 = vmatpush.msra.mxu0 %v43_v18  ;;  %v29_v31 = vmul.f32 %v2351_v29, %v24_v28  ;;  %193 = vmatpush.msra.mxu3 %v174_v32  ;;  %v236_v37 = vld [vmem:[%s3467_s1 + $0xc0] sm:$0xff]  ;;  %v235_v39 = vld [vmem:[%s3467_s1 + $0xb8] sm:$0xff]  ;;  %v168_v40 = vld [vmem:[%s3467_s1 + $0x70] sm:$0xff] }
   0xa   :  { %98 = vmatpush.msra.mxu1 %v39_v20  ;;  %2084 = vmatmul.msk.f32.vlgmr.msra.gmra.mxu0 %vm47_vm2, %v17_v9  ;;  %v234_v41 = vld [vmem:[%s3467_s1 + $0xb0] sm:$0xff]  ;;  %v167_v42 = vld [vmem:[%s3467_s1 + $0x68] sm:$0xff]  ;;  %v2236_v47 = vld [vmem:[%s3467_s1 + $0x60] ss:$0 sm:$0xff] }
   0xb   :  { %2088 = vmatmul.msk.f32.vlgmr.msra.gmra.mxu2 %vm47_vm2, %v37_v24  ;;  %2086 = vmatmul.msk.f32.vlgmr.msra.gmra.mxu1 %vm47_vm2, %v28_v25  ;;  %v233_v43 = vld [vmem:[%s3467_s1 + $0xa8] sm:$0xff]  ;;  %v154_v1 = vld [vmem:[%s3469_s2 + $0x20] sm:$0xff]  ;;  %v163_v2 = vld [vmem:[%s3469_s2 + $0x30] sm:$0xff] }
   0xc   :  { %194 = vmatpush.msra.mxu3 %v173_v33  ;;  %222 = vmatpush.msrb.mxu0 %v170_v36  ;;  %v155_v9 = vld [vmem:[%s3469_s2 + $0x28] sm:$0xff]  ;;  %v276_v15 = vld [vmem:[%s3467_s1 + $0xe0] sm:$0xff]  ;;  %v275_v17 = vld [vmem:[%s3467_s1 + $0xd8] sm:$0xff] }
   0xd   :  { %255 = vmatpush.msrb.mxu1 %v236_v37  ;;  %v277_v14 = vld [vmem:[%s3467_s1 + $0xe8] sm:$0xff]  ;;  %v274_v18 = vld [vmem:[%s3467_s1 + $0xd0] sm:$0xff] }
   0xe   :  { %195 = vmatpush.msra.mxu3 %v172_v34  ;;  %223 = vmatpush.msrb.mxu0 %v169_v38  ;;  %v2237_v24 = vld [vmem:[%s3467_s1 + $0xc8] ss:$0 sm:$0xff]  ;;  %v332_v37 = vld [vmem:[%s3467_s1 + $0x130] sm:$0xff] }
   0xf   :  { %256 = vmatpush.msrb.mxu1 %v235_v39  ;;  %298 = vmatpush.msrb.mxu2 %v277_v14  ;;  %v331_v38 = vld [vmem:[%s3467_s1 + $0x128] sm:$0xff]  ;;  %v330_v39 = vld [vmem:[%s3467_s1 + $0x120] sm:$0xff] }
  0x10   :  { %196 = vmatpush.msra.mxu3 %v171_v35  ;;  %224 = vmatpush.msrb.mxu0 %v168_v40  ;;  %v329_v40 = vld [vmem:[%s3467_s1 + $0x118] sm:$0xff] }
  0x11   :  { %257 = vmatpush.msrb.mxu1 %v234_v41  ;;  %299 = vmatpush.msrb.mxu2 %v276_v15  ;;  %v328_v41 = vld [vmem:[%s3467_s1 + $0x110] sm:$0xff] }
  0x12   :  { %2085 = vmatmul.msk.f32.gmra.mxu0 %vm47_vm2, %v18_v11  ;;  %v164_v11 = vld [vmem:[%s3469_s2 + $0x38] sm:$0xff]  ;;  %351 = vmatpush.msrb.mxu3 %v332_v37 }
  0x13   :  { %2089 = vmatmul.msk.f32.gmra.mxu2 %vm47_vm2, %v38_v30  ;;  %2087 = vmatmul.msk.f32.gmra.mxu1 %vm47_vm2, %v29_v31  ;;  %v472_v37 = vld [vmem:[%s3470_s3 + $0x18] sm:$0xff] }
  0x14   :  { %225 = vmatpush.msrb.mxu0 %v167_v42  ;;  %258 = vmatpush.msrb.mxu1 %v233_v43  ;;  %v394_v42 = vld [vmem:[%s3467_s1 + $0x150] sm:$0xff]  ;;  %v327_v43 = vld [vmem:[%s3467_s1 + $0x108] sm:$0xff] }
  0x15   :  { %300 = vmatpush.msrb.mxu2 %v275_v17  ;;  %352 = vmatpush.msrb.mxu3 %v331_v38  ;;  %v470_v38 = vld [vmem:[%s3470_s3 + $0x8] sm:$0xff] }
  0x16   :  { %380 = vmatpush.msra.mxu0 %v328_v41  ;;  %413 = vmatpush.msra.mxu1 %v394_v42  ;;  %v640_v41 = vld [vmem:[%s3467_s1 + $0x1e0] sm:$0xff]  ;;  %v639_v42 = vld [vmem:[%s3467_s1 + $0x1d8] sm:$0xff] }
  0x17   :  { %301 = vmatpush.msrb.mxu2 %v274_v18  ;;  %353 = vmatpush.msrb.mxu3 %v330_v39  ;;  %v471_v39 = vld [vmem:[%s3470_s3 + $0x10] sm:$0xff] }
  0x18   :  { %381 = vmatpush.msra.mxu0 %v327_v43  ;;  %v638_v43 = vld [vmem:[%s3467_s1 + $0x1d0] sm:$0xff] }
  0x19   :  { %354 = vmatpush.msrb.mxu3 %v329_v40  ;;  %v551_v40 = vld [vmem:[%s3467_s1 + $0x1a8] sm:$0xff] }
  0x87   :  { %v71_v44 = vpop.f32.mrf.mxu0 }
  0x88   :  { %v100_v45 = vpop.f32.mrf.mxu1 }
  0x89   :  { %v101_v46 = vadd.f32 %v100_v45, %v71_v44  ;;  %v393_v44 = vld [vmem:[%s3467_s1 + $0x148] sm:$0xff]  ;;  %v326_v45 = vld [vmem:[%s3467_s1 + $0x100] sm:$0xff] }
  0x8a   :  { %414 = vmatpush.msra.mxu1 %v393_v44  ;;  %382 = vmatpush.msra.mxu0 %v326_v45  ;;  %v637_v44 = vld [vmem:[%s3467_s1 + $0x1c8] sm:$0xff]  ;;  %v550_v45 = vld [vmem:[%s3467_s1 + $0x1a0] sm:$0xff] }
  0x8e   :  { %v133_v48 = vpop.f32.mrf.mxu2 }
  0x8f   :  { %v139_v49 = vadd.f32 %v133_v48, %v101_v46  ;;  %v74_v50 = vpop.f32.mrf.mxu0  ;;  %v392_v46 = vld [vmem:[%s3467_s1 + $0x140] sm:$0xff]  ;;  %v391_v48 = vld [vmem:[%s3467_s1 + $0x138] sm:$0xff] }
  0x90   :  { %v103_v51 = vpop.f32.mrf.mxu1  ;;  %415 = vmatpush.msra.mxu1 %v392_v46  ;;  %v549_v46 = vld [vmem:[%s3467_s1 + $0x198] sm:$0xff] }
  0x91   :  { %v2397_v52 = vadd.f32 %v2236_v47, %v139_v49  ;;  %v104_v54 = vadd.f32 %v103_v51, %v74_v50  ;;  %v2238_v49 = vld [vmem:[%s3467_s1 + $0xf0] ss:$0 sm:$0xff] }
  0x92   :  { %416 = vmatpush.msra.mxu1 %v391_v48  ;;  %v547_v48 = vld [vmem:[%s3467_s1 + $0x188] sm:$0xff] }
  0x93   :  { %v145_v53 = vmax.f32 %v2397_v52, 0.0 }
  0x95   :  { %v147_v55 = vmax.f32 %v145_v53, 0.0 }
  0x96   :  { %v136_v56 = vpop.f32.mrf.mxu2 }
  0x97   :  { %v140_v57 = vadd.f32 %v136_v56, %v104_v54  ;;  %2090 = vmatmul.msk.f32.vlgmr.msra.gmra.mxu3 %vm47_vm2, %v147_v55  ;;  %v149_v61 = vrot.slane %v147_v55, 5  ;;  %v158_v62 = vrot.slane %v147_v55, 3 }
  0x99   :  { %v2403_v58 = vadd.f32 %v2236_v47, %v140_v57  ;;  %v325_v47 = vld [vmem:[%s3467_s1 + $0xf8] sm:$0xff] }
  0x9a   :  { %383 = vmatpush.msra.mxu0 %v325_v47  ;;  %v548_v47 = vld [vmem:[%s3467_s1 + $0x190] sm:$0xff] }
  0x9b   :  { %v146_v59 = vmax.f32 %v2403_v58, 0.0 }
  0x9d   :  { %v148_v60 = vmax.f32 %v146_v59, 0.0 }
  0x9f   :  { %v150_v63 = vrot.slane %v148_v60, 5  ;;  %v159_v0 = vrot.slane %v148_v60, 3  ;;  %2091 = vmatmul.msk.f32.gmra.mxu3 %vm47_vm2, %v148_v60 }
  0xa1   :  { %v153_v3 = vsel %vm151_vm3, %v150_v63, %v149_v61  ;;  %v161_v4 = vsel %vm160_vm4, %v158_v62, %v159_v0  ;;  %v152_v8 = vsel %vm151_vm3, %v149_v61, %v150_v63  ;;  %v162_v10 = vsel %vm160_vm4, %v159_v0, %v158_v62 }
  0xa2   :  { %v156_v5 = vmul.f32 %v154_v1, %v153_v3  ;;  %v165_v7 = vmul.f32 %v163_v2, %v161_v4  ;;  %v157_v12 = vmul.f32 %v155_v9, %v152_v8  ;;  %v166_v13 = vmul.f32 %v164_v11, %v162_v10  ;;  %v2239_v11 = vld [vmem:[%s3467_s1 + $0x158] ss:$0 sm:$0xff] }
  0xa4   :  { %2092 = vmatmul.msk.f32.vlgmr.msrb.gmra.mxu0 %vm47_vm2, %v156_v5  ;;  %2094 = vmatmul.msk.f32.vlgmr.msrb.gmra.mxu1 %vm47_vm2, %v165_v7 }
  0xac   :  { %2093 = vmatmul.msk.f32.gmra.mxu0 %vm47_vm2, %v157_v12  ;;  %2095 = vmatmul.msk.f32.gmra.mxu1 %vm47_vm2, %v166_v13 }
 0x11a   :  { %v198_v19 = vpop.f32.mrf.mxu3 }
 0x121   :  { %v227_v20 = vpop.f32.mrf.mxu0  ;;  %v260_v22 = vpop.f32.mrf.mxu1 }
 0x122   :  { %v228_v23 = vadd.f32 %v227_v20, %v198_v19  ;;  %v201_v30 = vpop.f32.mrf.mxu3 }
 0x124   :  { %v266_v25 = vadd.f32 %v260_v22, %v228_v23 }
 0x126   :  { %v270_v26 = vadd.f32 %v2237_v24, %v266_v25  ;;  %v554_v25 = vld [vmem:[%s3467_s1 + $0x1c0] sm:$0xff] }
 0x127   :  { %579 = vmatpush.msrb.mxu1 %v554_v25 }
 0x128   :  { %v272_v28 = vmax.f32 %v270_v26, 0.0  ;;  %v553_v26 = vld [vmem:[%s3467_s1 + $0x1b8] sm:$0xff] }
 0x129   :  { %v230_v31 = vpop.f32.mrf.mxu0  ;;  %v263_v33 = vpop.f32.mrf.mxu1  ;;  %580 = vmatpush.msrb.mxu1 %v553_v26  ;;  %v821_v26 = vld [vmem:[%s3467_s1 + $0x248] sm:$0xff] }
 0x12a   :  { %v231_v32 = vadd.f32 %v230_v31, %v201_v30  ;;  %2096 = vmatmul.msk.f32.vlgmr.msrb.gmra.mxu2 %vm47_vm2, %v272_v28  ;;  %v552_v28 = vld [vmem:[%s3467_s1 + $0x1b0] sm:$0xff]  ;;  %v2240_v30 = vld [vmem:[%s3467_s1 + $0x180] ss:$0 sm:$0xff] }
 0x12b   :  { %581 = vmatpush.msrb.mxu1 %v552_v28 }
 0x12c   :  { %v267_v34 = vadd.f32 %v263_v33, %v231_v32 }
 0x12d   :  { %582 = vmatpush.msrb.mxu1 %v551_v40  ;;  %v729_v40 = vld [vmem:[%s3467_s1 + $0x1f8] sm:$0xff] }
 0x12e   :  { %v271_v35 = vadd.f32 %v2237_v24, %v267_v34 }
 0x130   :  { %v273_v36 = vmax.f32 %v271_v35, 0.0 }
 0x132   :  { %2097 = vmatmul.msk.f32.gmra.mxu2 %vm47_vm2, %v273_v36  ;;  %v469_v36 = vld [vmem:[%s3470_s3] sm:$0xff] }
 0x1ad   :  { %v303_v50 = vpop.f32.mrf.mxu2 }
 0x1ae   :  { %v304_v51 = vadd.f32 %v2238_v49, %v303_v50 }
 0x1b0   :  { %v309_v54 = vadd.f32 %v304_v51, %v145_v53 }
 0x1b2   :  { %v311_v55 = vmax.f32 %v309_v54, 0.0 }
 0x1b4   :  { %2098 = vmatmul.msk.f32.vlgmr.msrb.gmra.mxu3 %vm47_vm2, %v311_v55  ;;  %v313_v62 = vrot.slane %v311_v55, 7  ;;  %v319_v63 = vrot.slane %v311_v55, 1  ;;  %v2585_v55 = vld [vmem:[%s3469_s2 + $0x60] sm:$0xff] }
 0x1b5   :  { %v306_v56 = vpop.f32.mrf.mxu2 }
 0x1b6   :  { %v307_v57 = vadd.f32 %v2238_v49, %v306_v56 }
 0x1b8   :  { %v310_v60 = vadd.f32 %v307_v57, %v146_v59 }
 0x1ba   :  { %v312_v61 = vmax.f32 %v310_v60, 0.0 }
 0x1bc   :  { %v314_v0 = vrot.slane %v312_v61, 7  ;;  %v320_v1 = vrot.slane %v312_v61, 1  ;;  %2099 = vmatmul.msk.f32.gmra.mxu3 %vm47_vm2, %v312_v61 }
 0x1be   :  { %v316_v2 = vsel %vm23_vm1, %v314_v0, %v313_v62  ;;  %v321_v52 = vsel %vm32_vm0, %v319_v63, %v320_v1  ;;  %v315_v58 = vsel %vm23_vm1, %v313_v62, %v314_v0  ;;  %v322_v59 = vsel %vm32_vm0, %v320_v1, %v319_v63  ;;  %v2596_v62 = vld [vmem:[%s3469_s2 + $0x68] sm:$0xff] }
 0x1bf   :  { %v317_v53 = vmul.f32 %v316_v2, %v2328_v21  ;;  %v323_v3 = vmul.f32 %v321_v52, %v2313_v16  ;;  %v318_v4 = vmul.f32 %v315_v58, %v2351_v29  ;;  %v324_v5 = vmul.f32 %v322_v59, %v2344_v27  ;;  %v435_v16 = vld [vmem:[%s3467_s1 + $0x178] sm:$0xff]  ;;  %v434_v21 = vld [vmem:[%s3467_s1 + $0x170] sm:$0xff]  ;;  %v433_v29 = vld [vmem:[%s3467_s1 + $0x168] sm:$0xff] }
 0x1c0   :  { %456 = vmatpush.msra.mxu2 %v435_v16  ;;  %v432_v27 = vld [vmem:[%s3467_s1 + $0x160] sm:$0xff]  ;;  %v2608_v58 = vld [vmem:[%s3469_s2 + $0x70] sm:$0xff] }
 0x1c1   :  { %2100 = vmatmul.msk.f32.vlgmr.msra.gmra.mxu0 %vm47_vm2, %v317_v53  ;;  %2102 = vmatmul.msk.f32.vlgmr.msra.gmra.mxu1 %vm47_vm2, %v323_v3 }
 0x1c2   :  { %457 = vmatpush.msra.mxu2 %v434_v21  ;;  %620 = vmatpush.msra.mxu1 %v550_v45 }
 0x1c4   :  { %458 = vmatpush.msra.mxu2 %v433_v29  ;;  %621 = vmatpush.msra.mxu1 %v549_v46 }
 0x1c6   :  { %459 = vmatpush.msra.mxu2 %v432_v27  ;;  %622 = vmatpush.msra.mxu1 %v548_v47  ;;  %v2626_v27 = vld [vmem:[%s3469_s2 + $0x78] sm:$0xff] }
 0x1c8   :  { %623 = vmatpush.msra.mxu1 %v547_v48 }
 0x1c9   :  { %2101 = vmatmul.msk.f32.gmra.mxu0 %vm47_vm2, %v318_v4  ;;  %2103 = vmatmul.msk.f32.gmra.mxu1 %vm47_vm2, %v324_v5  ;;  %v2615_v4 = vld [vmem:[%s3469_s2 + $0x40] sm:$0xff] }
 0x237   :  { %v356_v7 = vpop.f32.mrf.mxu3 }
 0x23e   :  { %v385_v8 = vpop.f32.mrf.mxu0  ;;  %v418_v9 = vpop.f32.mrf.mxu1 }
 0x23f   :  { %v386_v10 = vadd.f32 %v385_v8, %v356_v7  ;;  %v359_v15 = vpop.f32.mrf.mxu3 }
 0x241   :  { %v424_v12 = vadd.f32 %v418_v9, %v386_v10  ;;  %v2634_v9 = vld [vmem:[%s3469_s2 + $0x48] sm:$0xff] }
 0x243   :  { %v428_v13 = vadd.f32 %v2239_v11, %v424_v12 }
 0x245   :  { %v430_v14 = vmax.f32 %v428_v13, 0.0  ;;  %v2644_v13 = vld [vmem:[%s3469_s2 + $0x50] sm:$0xff] }
 0x246   :  { %v388_v17 = vpop.f32.mrf.mxu0  ;;  %v421_v19 = vpop.f32.mrf.mxu1 }
 0x247   :  { %v389_v18 = vadd.f32 %v388_v17, %v359_v15  ;;  %2104 = vmatmul.msk.f32.vlgmr.msra.gmra.mxu2 %vm47_vm2, %v430_v14  ;;  %v2653_v17 = vld [vmem:[%s3469_s2 + $0x58] sm:$0xff] }
 0x249   :  { %v425_v20 = vadd.f32 %v421_v19, %v389_v18 }
 0x24b   :  { %v429_v22 = vadd.f32 %v2239_v11, %v425_v20  ;;  %v735_v20 = vld [vmem:[%s3467_s1 + $0x228] sm:$0xff] }
 0x24d   :  { %v431_v23 = vmax.f32 %v429_v22, 0.0  ;;  %v734_v22 = vld [vmem:[%s3467_s1 + $0x220] sm:$0xff] }
 0x24f   :  { %2105 = vmatmul.msk.f32.gmra.mxu2 %vm47_vm2, %v431_v23  ;;  %v733_v23 = vld [vmem:[%s3467_s1 + $0x218] sm:$0xff] }
 0x2ca   :  { %v461_v24 = vpop.f32.mrf.mxu2 }
 0x2cb   :  { %v462_v32 = vadd.f32 %v2240_v30, %v461_v24  ;;  %v732_v24 = vld [vmem:[%s3467_s1 + $0x210] sm:$0xff] }
 0x2cd   :  { %v467_v35 = vadd.f32 %v462_v32, %v309_v54  ;;  %v818_v32 = vld [vmem:[%s3467_s1 + $0x230] sm:$0xff] }
 0x2d2   :  { %v464_v31 = vpop.f32.mrf.mxu2 }
 0x2d3   :  { %v465_v33 = vadd.f32 %v2240_v30, %v464_v31  ;;  %v820_v30 = vld [vmem:[%s3467_s1 + $0x240] sm:$0xff]  ;;  %v819_v31 = vld [vmem:[%s3467_s1 + $0x238] sm:$0xff] }
 0x2d5   :  { %v468_v34 = vadd.f32 %v465_v33, %v310_v60 }
 0x2d7   :  { %500 = vmatpush.msrb.mxu2 %v468_v34  ;;  %2234 = vmatpush.msra.mxu3 %v468_v34 }
 0x2d9   :  { %501 = vmatpush.msrb.mxu2 %v467_v35  ;;  %2235 = vmatpush.msra.mxu3 %v467_v35  ;;  %v731_v35 = vld [vmem:[%s3467_s1 + $0x208] sm:$0xff] }
 0x2da   :  { %2106 = vmatmul.msk.f32.vlgmr.msrb.gmra.mxu2 %vm473_vm5, %v469_v36  ;;  %2109 = vmatmul.msk.f32.vlgmr.msra.gmra.mxu3 %vm473_vm5, %v472_v37  ;;  %v730_v37 = vld [vmem:[%s3467_s1 + $0x200] sm:$0xff] }
 0x2db   :  { %665 = vmatpush.msra.mxu2 %v640_v41  ;;  %760 = vmatpush.msrb.mxu3 %v735_v20  ;;  %v728_v41 = vld [vmem:[%s3467_s1 + $0x1f0] sm:$0xff] }
 0x2dc   :  { %801 = vmatpush.msrb.mxu0 %v731_v35  ;;  %v706_v35 = vld [vmem:[%s3469_s2 + $0x90] sm:$0xff] }
 0x2dd   :  { %666 = vmatpush.msra.mxu2 %v639_v42  ;;  %761 = vmatpush.msrb.mxu3 %v734_v22 }
 0x2de   :  { %802 = vmatpush.msrb.mxu0 %v730_v37 }
 0x2df   :  { %667 = vmatpush.msra.mxu2 %v638_v43  ;;  %762 = vmatpush.msrb.mxu3 %v733_v23 }
 0x2e0   :  { %803 = vmatpush.msrb.mxu0 %v729_v40  ;;  %v880_v40 = vld [vmem:[%s3467_s1 + $0x270] sm:$0xff] }
 0x2e1   :  { %668 = vmatpush.msra.mxu2 %v637_v44  ;;  %763 = vmatpush.msrb.mxu3 %v732_v24 }
 0x2e2   :  { %2107 = vmatmul.msk.f32.gmra.mxu2 %vm473_vm5, %v470_v38  ;;  %804 = vmatpush.msrb.mxu0 %v728_v41  ;;  %v879_v41 = vld [vmem:[%s3467_s1 + $0x268] sm:$0xff] }
 0x2e3   :  { %907 = vmatpush.msrb.mxu2 %v880_v40 }
 0x2e5   :  { %908 = vmatpush.msrb.mxu2 %v879_v41 }
 0x2ea   :  { %2108 = vmatmul.msk.f32.gmra.mxu2 %vm473_vm5, %v471_v39  ;;  %v2241_v39 = vld [vmem:[%s3467_s1 + $0x1e8] ss:$0 sm:$0xff] }
 0x35d   :  { %v503_v49 = vpop.f32.mrf.mxu2  ;;  %v512_v0 = vpop.f32.mrf.mxu3 }
 0x35e   :  { %2110 = vmatmul.msk.f32.vlgmr.msrb.gmra.mxu1 %vm47_vm2, %v503_v49  ;;  %v531_v51 = vrot.slane %v503_v49, 1  ;;  %v534_v2 = vrot.slane %v512_v0, 1  ;;  %v515_v52 = vrot.slane %v503_v49, 7  ;;  %v518_v53 = vrot.slane %v512_v0, 7 }
 0x35f   :  { %846 = vmatpush.msrb.mxu1 %v821_v26  ;;  %v705_v26 = vld [vmem:[%s3469_s2 + $0x88] sm:$0xff] }
 0x360   :  { %v522_v59 = vsel %vm23_vm1, %v518_v53, %v515_v52  ;;  %v538_v29 = vsel %vm32_vm0, %v534_v2, %v531_v51 }
 0x361   :  { %v527_v16 = vmul.f32 %v2615_v4, %v522_v59  ;;  %v546_v7 = vmul.f32 %v2626_v27, %v538_v29  ;;  %847 = vmatpush.msrb.mxu1 %v820_v30  ;;  %v723_v30 = vld [vmem:[%s3469_s2 + $0xb8] sm:$0xff] }
 0x363   :  { %848 = vmatpush.msrb.mxu1 %v819_v31 }
 0x365   :  { %v506_v50 = vpop.f32.mrf.mxu2  ;;  %849 = vmatpush.msrb.mxu1 %v818_v32 }
 0x366   :  { %v532_v54 = vrot.slane %v506_v50, 1  ;;  %2111 = vmatmul.msk.f32.gmra.mxu1 %vm47_vm2, %v506_v50  ;;  %v516_v21 = vrot.slane %v506_v50, 7 }
 0x368   :  { %v537_v56 = vsel %vm32_vm0, %v531_v51, %v532_v54  ;;  %v521_v8 = vsel %vm23_vm1, %v515_v52, %v516_v21 }
 0x369   :  { %v543_v57 = vmul.f32 %v2585_v55, %v537_v56  ;;  %v528_v10 = vmul.f32 %v2634_v9, %v521_v8 }
 0x36b   :  { %2118 = vmatmul.msk.f32.vlgmr.msra.gmra.mxu2 %vm47_vm2, %v543_v57 }
 0x36d   :  { %v509_v60 = vpop.f32.mrf.mxu2 }
 0x36e   :  { %v533_v61 = vrot.slane %v509_v60, 1  ;;  %2112 = vmatmul.msk.f32.gmra.mxu1 %vm47_vm2, %v509_v60  ;;  %v517_v11 = vrot.slane %v509_v60, 7 }
 0x370   :  { %v536_v63 = vsel %vm32_vm0, %v532_v54, %v533_v61  ;;  %v535_v3 = vsel %vm32_vm0, %v533_v61, %v534_v2  ;;  %v520_v12 = vsel %vm23_vm1, %v516_v21, %v517_v11  ;;  %v519_v15 = vsel %vm23_vm1, %v517_v11, %v518_v53  ;;  %v720_v61 = vld [vmem:[%s3469_s2 + $0xa0] sm:$0xff] }
 0x371   :  { %v544_v1 = vmul.f32 %v2596_v62, %v536_v63  ;;  %v545_v5 = vmul.f32 %v2608_v58, %v535_v3  ;;  %v529_v14 = vmul.f32 %v2644_v13, %v520_v12  ;;  %v530_v18 = vmul.f32 %v2653_v17, %v519_v15  ;;  %v704_v15 = vld [vmem:[%s3469_s2 + $0x80] sm:$0xff] }
 0x373   :  { %2119 = vmatmul.msk.f32.gmra.mxu2 %vm47_vm2, %v544_v1 }
 0x376   :  { %2113 = vmatmul.msk.f32.gmra.mxu1 %vm47_vm2, %v512_v0 }
 0x37b   :  { %2120 = vmatmul.msk.f32.gmra.mxu2 %vm47_vm2, %v545_v5  ;;  %v721_v5 = vld [vmem:[%s3469_s2 + $0xa8] sm:$0xff] }
 0x37e   :  { %2114 = vmatmul.msk.f32.vlgmr.msra.gmra.mxu1 %vm47_vm2, %v527_v16 }
 0x383   :  { %2121 = vmatmul.msk.f32.gmra.mxu2 %vm47_vm2, %v546_v7 }
 0x386   :  { %2115 = vmatmul.msk.f32.gmra.mxu1 %vm47_vm2, %v528_v10 }
 0x38e   :  { %2116 = vmatmul.msk.f32.gmra.mxu1 %vm47_vm2, %v529_v14 }
 0x396   :  { %2117 = vmatmul.msk.f32.gmra.mxu1 %vm47_vm2, %v530_v18  ;;  %v722_v18 = vld [vmem:[%s3469_s2 + $0xb0] sm:$0xff] }
 0x3db   :  { %v584_v19 = vpop.f32.mrf.mxu1 }
 0x3e3   :  { %v587_v25 = vpop.f32.mrf.mxu1 }
 0x3eb   :  { %v590_v28 = vpop.f32.mrf.mxu1 }
 0x3ee   :  { %v670_v34 = vpop.f32.mrf.mxu2 }
 0x3f3   :  { %v593_v33 = vpop.f32.mrf.mxu1 }
 0x3f6   :  { %v673_v44 = vpop.f32.mrf.mxu2 }
 0x3fb   :  { %v625_v36 = vpop.f32.mrf.mxu1 }
 0x3fc   :  { %v626_v38 = vadd.f32 %v625_v36, %v584_v19 }
 0x3fe   :  { %v682_v42 = vadd.f32 %v670_v34, %v626_v38  ;;  %v676_v51 = vpop.f32.mrf.mxu2  ;;  %v707_v38 = vld [vmem:[%s3469_s2 + $0x98] sm:$0xff] }
 0x400   :  { %v2696_v43 = vadd.f32 %v2241_v39, %v682_v42  ;;  %v878_v42 = vld [vmem:[%s3467_s1 + $0x260] sm:$0xff] }
 0x401   :  { %909 = vmatpush.msrb.mxu2 %v878_v42 }
 0x402   :  { %v692_v45 = vmax.f32 %v2696_v43, 0.0 }
 0x403   :  { %v628_v46 = vpop.f32.mrf.mxu1 }
 0x404   :  { %v629_v47 = vadd.f32 %v628_v46, %v587_v25  ;;  %2122 = vmatmul.msk.f32.vlgmr.msrb.gmra.mxu3 %vm47_vm2, %v692_v45  ;;  %v712_v56 = vrot.slane %v692_v45, 3  ;;  %v696_v11 = vrot.slane %v692_v45, 5 }
 0x406   :  { %v683_v48 = vadd.f32 %v673_v44, %v629_v47  ;;  %v679_v16 = vpop.f32.mrf.mxu2  ;;  %v877_v44 = vld [vmem:[%s3467_s1 + $0x258] sm:$0xff] }
 0x407   :  { %910 = vmatpush.msrb.mxu2 %v877_v44 }
 0x408   :  { %v2700_v49 = vadd.f32 %v2241_v39, %v683_v48 }
 0x40a   :  { %v693_v50 = vmax.f32 %v2700_v49, 0.0 }
 0x40b   :  { %v631_v54 = vpop.f32.mrf.mxu1 }
 0x40c   :  { %v632_v57 = vadd.f32 %v631_v54, %v590_v28  ;;  %v713_v60 = vrot.slane %v693_v50, 3  ;;  %2123 = vmatmul.msk.f32.gmra.mxu3 %vm47_vm2, %v693_v50  ;;  %v697_v24 = vrot.slane %v693_v50, 5  ;;  %v2242_v50 = vld [vmem:[%s3467_s1 + $0x250] ss:$0 sm:$0xff] }
 0x40e   :  { %v684_v63 = vadd.f32 %v676_v51, %v632_v57  ;;  %v718_v0 = vsel %vm160_vm4, %v712_v56, %v713_v60  ;;  %v702_v25 = vsel %vm151_vm3, %v696_v11, %v697_v24 }
 0x40f   :  { %v724_v1 = vmul.f32 %v720_v61, %v718_v0  ;;  %v709_v31 = vmul.f32 %v705_v26, %v702_v25  ;;  %v1048_v25 = vld [vmem:[%s3467_s1 + $0x2d0] sm:$0xff]  ;;  %v1047_v26 = vld [vmem:[%s3467_s1 + $0x2c8] sm:$0xff] }
 0x410   :  { %v2709_v2 = vadd.f32 %v2241_v39, %v684_v63 }
 0x411   :  { %2130 = vmatmul.msk.f32.vlgmr.msrb.gmra.mxu1 %vm47_vm2, %v724_v1 }
 0x412   :  { %v694_v52 = vmax.f32 %v2709_v2, 0.0 }
 0x413   :  { %v634_v53 = vpop.f32.mrf.mxu1 }
 0x414   :  { %v635_v3 = vadd.f32 %v634_v53, %v593_v33  ;;  %v714_v59 = vrot.slane %v694_v52, 3  ;;  %2124 = vmatmul.msk.f32.gmra.mxu3 %vm47_vm2, %v694_v52  ;;  %v698_v33 = vrot.slane %v694_v52, 5 }
 0x416   :  { %v685_v21 = vadd.f32 %v679_v16, %v635_v3  ;;  %v717_v29 = vsel %vm160_vm4, %v713_v60, %v714_v59  ;;  %v701_v34 = vsel %vm151_vm3, %v697_v24, %v698_v33  ;;  %v1049_v24 = vld [vmem:[%s3467_s1 + $0x2d8] sm:$0xff] }
 0x417   :  { %v725_v7 = vmul.f32 %v721_v5, %v717_v29  ;;  %v710_v36 = vmul.f32 %v706_v35, %v701_v34  ;;  %1074 = vmatpush.msra.mxu1 %v1049_v24  ;;  %v956_v35 = vld [vmem:[%s3467_s1 + $0x280] sm:$0xff] }
 0x418   :  { %v2719_v8 = vadd.f32 %v2241_v39, %v685_v21 }
 0x419   :  { %2131 = vmatmul.msk.f32.gmra.mxu1 %vm47_vm2, %v725_v7 }
 0x41a   :  { %v695_v10 = vmax.f32 %v2719_v8, 0.0  ;;  %1075 = vmatpush.msra.mxu1 %v1048_v25 }
 0x41c   :  { %v699_v12 = vrot.slane %v695_v10, 5  ;;  %v715_v14 = vrot.slane %v695_v10, 3  ;;  %2125 = vmatmul.msk.f32.gmra.mxu3 %vm47_vm2, %v695_v10  ;;  %1076 = vmatpush.msra.mxu1 %v1047_v26 }
 0x41e   :  { %v703_v19 = vsel %vm151_vm3, %v699_v12, %v696_v11  ;;  %v716_v20 = vsel %vm160_vm4, %v714_v59, %v715_v14  ;;  %v719_v28 = vsel %vm160_vm4, %v715_v14, %v712_v56  ;;  %v700_v37 = vsel %vm151_vm3, %v698_v33, %v699_v12  ;;  %v957_v33 = vld [vmem:[%s3467_s1 + $0x288] sm:$0xff] }
 0x41f   :  { %v708_v22 = vmul.f32 %v704_v15, %v703_v19  ;;  %v726_v23 = vmul.f32 %v722_v18, %v716_v20  ;;  %v727_v32 = vmul.f32 %v723_v30, %v719_v28  ;;  %v711_v39 = vmul.f32 %v707_v38, %v700_v37  ;;  %v963_v19 = vld [vmem:[%s3467_s1 + $0x2b8] sm:$0xff]  ;;  %v962_v20 = vld [vmem:[%s3467_s1 + $0x2b0] sm:$0xff]  ;;  %v1046_v28 = vld [vmem:[%s3467_s1 + $0x2c0] sm:$0xff] }
 0x420   :  { %988 = vmatpush.msra.mxu3 %v963_v19  ;;  %1077 = vmatpush.msra.mxu1 %v1046_v28  ;;  %v959_v30 = vld [vmem:[%s3467_s1 + $0x298] sm:$0xff] }
 0x421   :  { %2126 = vmatmul.msk.f32.vlgmr.msrb.gmra.mxu0 %vm47_vm2, %v708_v22  ;;  %2132 = vmatmul.msk.f32.gmra.mxu1 %vm47_vm2, %v726_v23  ;;  %v961_v22 = vld [vmem:[%s3467_s1 + $0x2a8] sm:$0xff]  ;;  %v960_v23 = vld [vmem:[%s3467_s1 + $0x2a0] sm:$0xff] }
 0x422   :  { %989 = vmatpush.msra.mxu3 %v962_v20  ;;  %1029 = vmatpush.msra.mxu0 %v959_v30 }
 0x424   :  { %990 = vmatpush.msra.mxu3 %v961_v22 }
 0x426   :  { %991 = vmatpush.msra.mxu3 %v960_v23 }
 0x429   :  { %2127 = vmatmul.msk.f32.gmra.mxu0 %vm47_vm2, %v709_v31  ;;  %2133 = vmatmul.msk.f32.gmra.mxu1 %vm47_vm2, %v727_v32  ;;  %v2243_v31 = vld [vmem:[%s3467_s1 + $0x278] ss:$0 sm:$0xff]  ;;  %v958_v32 = vld [vmem:[%s3467_s1 + $0x290] sm:$0xff] }
 0x42a   :  { %1030 = vmatpush.msra.mxu0 %v958_v32 }
 0x42c   :  { %1031 = vmatpush.msra.mxu0 %v957_v33 }
 0x42e   :  { %1032 = vmatpush.msra.mxu0 %v956_v35 }
 0x431   :  { %2128 = vmatmul.msk.f32.gmra.mxu0 %vm47_vm2, %v710_v36 }
 0x439   :  { %2129 = vmatmul.msk.f32.gmra.mxu0 %vm47_vm2, %v711_v39 }
 0x487   :  { %v765_v45 = vpop.f32.mrf.mxu3 }
 0x48e   :  { %v851_v46 = vpop.f32.mrf.mxu1 }
 0x48f   :  { %v768_v54 = vpop.f32.mrf.mxu3 }
 0x496   :  { %v854_v57 = vpop.f32.mrf.mxu1 }
 0x497   :  { %v771_v52 = vpop.f32.mrf.mxu3 }
 0x49e   :  { %v806_v47 = vpop.f32.mrf.mxu0  ;;  %v857_v3 = vpop.f32.mrf.mxu1 }
 0x49f   :  { %v807_v48 = vadd.f32 %v806_v47, %v765_v45  ;;  %v774_v7 = vpop.f32.mrf.mxu3 }
 0x4a1   :  { %v863_v51 = vadd.f32 %v851_v46, %v807_v48 }
 0x4a3   :  { %v869_v56 = vadd.f32 %v2242_v50, %v863_v51 }
 0x4a5   :  { %v873_v60 = vmax.f32 %v869_v56, 0.0 }
 0x4a6   :  { %v809_v61 = vpop.f32.mrf.mxu0  ;;  %v860_v12 = vpop.f32.mrf.mxu1 }
 0x4a7   :  { %v810_v63 = vadd.f32 %v809_v61, %v768_v54  ;;  %2134 = vmatmul.msk.f32.vlgmr.msrb.gmra.mxu2 %vm47_vm2, %v873_v60 }
 0x4a9   :  { %v864_v0 = vadd.f32 %v854_v57, %v810_v63 }
 0x4ab   :  { %v870_v1 = vadd.f32 %v2242_v50, %v864_v0 }
 0x4ad   :  { %v874_v53 = vmax.f32 %v870_v1, 0.0 }
 0x4ae   :  { %v812_v59 = vpop.f32.mrf.mxu0 }
 0x4af   :  { %v813_v5 = vadd.f32 %v812_v59, %v771_v52  ;;  %2135 = vmatmul.msk.f32.gmra.mxu2 %vm47_vm2, %v874_v53 }
 0x4b1   :  { %v865_v16 = vadd.f32 %v857_v3, %v813_v5 }
 0x4b3   :  { %v871_v21 = vadd.f32 %v2242_v50, %v865_v16 }
 0x4b5   :  { %v875_v29 = vmax.f32 %v871_v21, 0.0 }
 0x4b6   :  { %v815_v10 = vpop.f32.mrf.mxu0 }
 0x4b7   :  { %v816_v11 = vadd.f32 %v815_v10, %v774_v7  ;;  %2136 = vmatmul.msk.f32.gmra.mxu2 %vm47_vm2, %v875_v29 }
 0x4b9   :  { %v866_v14 = vadd.f32 %v860_v12, %v816_v11 }
 0x4bb   :  { %v872_v15 = vadd.f32 %v2242_v50, %v866_v14 }
 0x4bd   :  { %v876_v18 = vmax.f32 %v872_v15, 0.0  ;;  %v2244_v15 = vld [vmem:[%s3467_s1 + $0x2e0] ss:$0 sm:$0xff] }
 0x4bf   :  { %2137 = vmatmul.msk.f32.gmra.mxu2 %vm47_vm2, %v876_v18 }
 0x52a   :  { %v912_v34 = vpop.f32.mrf.mxu2 }
 0x52b   :  { %v913_v36 = vadd.f32 %v2243_v31, %v912_v34 }
 0x52d   :  { %v2819_v37 = vadd.f32 %v913_v36, %v2696_v43 }
 0x52f   :  { %v928_v38 = vmax.f32 %v2819_v37, 0.0 }
 0x531   :  { %2138 = vmatmul.msk.f32.vlgmr.msra.gmra.mxu3 %vm47_vm2, %v928_v38  ;;  %v944_v44 = vrot.slane %v928_v38, 1 }
 0x532   :  { %v915_v39 = vpop.f32.mrf.mxu2 }
 0x533   :  { %v916_v40 = vadd.f32 %v2243_v31, %v915_v39 }
 0x535   :  { %v2824_v41 = vadd.f32 %v916_v40, %v2700_v49 }
 0x537   :  { %v929_v42 = vmax.f32 %v2824_v41, 0.0 }
 0x539   :  { %v945_v45 = vrot.slane %v929_v42, 1  ;;  %2139 = vmatmul.msk.f32.gmra.mxu3 %vm47_vm2, %v929_v42  ;;  %v933_v53 = vrot.slane %v929_v42, 7 }
 0x53a   :  { %v918_v46 = vpop.f32.mrf.mxu2 }
 0x53b   :  { %v919_v47 = vadd.f32 %v2243_v31, %v918_v46  ;;  %v950_v43 = vsel %vm32_vm0, %v944_v44, %v945_v45 }
 0x53c   :  { %v952_v48 = vmul.f32 %v950_v43, %v2585_v55 }
 0x53d   :  { %v2832_v50 = vadd.f32 %v919_v47, %v2709_v2  ;;  %v932_v2 = vrot.slane %v928_v38, 7 }
 0x53e   :  { %2146 = vmatmul.msk.f32.vlgmr.msra.gmra.mxu1 %vm47_vm2, %v952_v48 }
 0x53f   :  { %v930_v49 = vmax.f32 %v2832_v50, 0.0  ;;  %v938_v3 = vsel %vm23_vm1, %v932_v2, %v933_v53 }
 0x540   :  { %v941_v5 = vmul.f32 %v938_v3, %v2634_v9  ;;  %v1107_v9 = vld [vmem:[%s3467_s1 + $0x2f8] sm:$0xff]  ;;  %v1300_v3 = vld [vmem:[%s3467_s1 + $0x348] sm:$0xff] }
 0x541   :  { %v946_v51 = vrot.slane %v930_v49, 1  ;;  %2140 = vmatmul.msk.f32.gmra.mxu3 %vm47_vm2, %v930_v49  ;;  %v934_v21 = vrot.slane %v930_v49, 7  ;;  %1337 = vmatpush.msrb.mxu0 %v1300_v3  ;;  %v3090_v3 = vld [vmem:[%s3469_s2 + $0xd0] sm:$0xff] }
 0x542   :  { %v921_v54 = vpop.f32.mrf.mxu2 }
 0x543   :  { %v922_v56 = vadd.f32 %v2243_v31, %v921_v54  ;;  %v949_v57 = vsel %vm32_vm0, %v945_v45, %v946_v51 }
 0x544   :  { %v953_v60 = vmul.f32 %v949_v57, %v2596_v62 }
 0x545   :  { %v2841_v61 = vadd.f32 %v922_v56, %v2719_v8 }
 0x546   :  { %2147 = vmatmul.msk.f32.gmra.mxu1 %vm47_vm2, %v953_v60 }
 0x547   :  { %v931_v55 = vmax.f32 %v2841_v61, 0.0 }
 0x549   :  { %v935_v63 = vrot.slane %v931_v55, 7  ;;  %v947_v0 = vrot.slane %v931_v55, 1  ;;  %2141 = vmatmul.msk.f32.gmra.mxu3 %vm47_vm2, %v931_v55 }
 0x54b   :  { %v939_v1 = vsel %vm23_vm1, %v935_v63, %v932_v2  ;;  %v948_v52 = vsel %vm32_vm0, %v946_v51, %v947_v0  ;;  %v951_v59 = vsel %vm32_vm0, %v947_v0, %v944_v44  ;;  %v936_v29 = vsel %vm23_vm1, %v934_v21, %v935_v63  ;;  %v2245_v51 = vld [vmem:[%s3467_s1 + $0x308] ss:$0 sm:$0xff] }
 0x54c   :  { %v940_v62 = vmul.f32 %v939_v1, %v2615_v4  ;;  %v954_v8 = vmul.f32 %v948_v52, %v2608_v58  ;;  %v955_v16 = vmul.f32 %v951_v59, %v2626_v27  ;;  %v937_v58 = vsel %vm23_vm1, %v933_v53, %v934_v21  ;;  %v1108_v27 = vld [vmem:[%s3467_s1 + $0x300] sm:$0xff]  ;;  %v1163_v53 = vld [vmem:[%s3470_s3 + $0x58] sm:$0xff]  ;;  %v1434_v21 = vld [vmem:[%s3467_s1 + $0x368] sm:$0xff] }
 0x54d   :  { %v942_v4 = vmul.f32 %v937_v58, %v2644_v13  ;;  %v943_v7 = vmul.f32 %v936_v29, %v2653_v17  ;;  %1135 = vmatpush.msra.mxu2 %v1108_v27  ;;  %v1106_v13 = vld [vmem:[%s3467_s1 + $0x2f0] sm:$0xff]  ;;  %v1105_v17 = vld [vmem:[%s3467_s1 + $0x2e8] sm:$0xff]  ;;  %v1156_v52 = vld [vmem:[%s3470_s3 + $0x20] sm:$0xff] }
 0x54e   :  { %2142 = vmatmul.msk.f32.vlgmr.msra.gmra.mxu0 %vm47_vm2, %v940_v62  ;;  %2148 = vmatmul.msk.f32.gmra.mxu1 %vm47_vm2, %v954_v8  ;;  %v1161_v62 = vld [vmem:[%s3470_s3 + $0x48] sm:$0xff]  ;;  %v1162_v8 = vld [vmem:[%s3470_s3 + $0x50] sm:$0xff]  ;;  %v1299_v59 = vld [vmem:[%s3467_s1 + $0x340] sm:$0xff] }
 0x54f   :  { %1136 = vmatpush.msra.mxu2 %v1107_v9  ;;  %1338 = vmatpush.msrb.mxu0 %v1299_v59  ;;  %v1433_v58 = vld [vmem:[%s3467_s1 + $0x360] sm:$0xff]  ;;  %v1431_v29 = vld [vmem:[%s3467_s1 + $0x350] sm:$0xff] }
 0x551   :  { %1137 = vmatpush.msra.mxu2 %v1106_v13 }
 0x553   :  { %1138 = vmatpush.msra.mxu2 %v1105_v17  ;;  %v2963_v17 = vld [vmem:[%s3469_s2 + $0x100] sm:$0xff] }
 0x555   :  { %1471 = vmatpush.msrb.mxu2 %v1434_v21  ;;  %v3100_v21 = vld [vmem:[%s3469_s2 + $0xd8] sm:$0xff] }
 0x556   :  { %2143 = vmatmul.msk.f32.gmra.mxu0 %vm47_vm2, %v941_v5  ;;  %2149 = vmatmul.msk.f32.gmra.mxu1 %vm47_vm2, %v955_v16  ;;  %v1298_v5 = vld [vmem:[%s3467_s1 + $0x338] sm:$0xff]  ;;  %v1297_v16 = vld [vmem:[%s3467_s1 + $0x330] sm:$0xff] }
 0x557   :  { %1339 = vmatpush.msrb.mxu0 %v1298_v5  ;;  %1472 = vmatpush.msrb.mxu2 %v1433_v58 }
 0x559   :  { %1340 = vmatpush.msrb.mxu0 %v1297_v16 }
 0x55e   :  { %2144 = vmatmul.msk.f32.gmra.mxu0 %vm47_vm2, %v942_v4  ;;  %v1432_v4 = vld [vmem:[%s3467_s1 + $0x358] sm:$0xff] }
 0x55f   :  { %1473 = vmatpush.msrb.mxu2 %v1432_v4 }
 0x561   :  { %1474 = vmatpush.msrb.mxu2 %v1431_v29 }
 0x566   :  { %2145 = vmatmul.msk.f32.gmra.mxu0 %vm47_vm2, %v943_v7 }
 0x5b4   :  { %v993_v10 = vpop.f32.mrf.mxu3 }
 0x5bb   :  { %v1079_v11 = vpop.f32.mrf.mxu1 }
 0x5bc   :  { %v996_v19 = vpop.f32.mrf.mxu3 }
 0x5c3   :  { %v1082_v22 = vpop.f32.mrf.mxu1 }
 0x5c4   :  { %v999_v30 = vpop.f32.mrf.mxu3 }
 0x5cb   :  { %v1034_v12 = vpop.f32.mrf.mxu0  ;;  %v1085_v32 = vpop.f32.mrf.mxu1 }
 0x5cc   :  { %v1035_v14 = vadd.f32 %v1034_v12, %v993_v10  ;;  %v1002_v39 = vpop.f32.mrf.mxu3 }
 0x5ce   :  { %v1091_v18 = vadd.f32 %v1079_v11, %v1035_v14 }
 0x5d0   :  { %v1097_v20 = vadd.f32 %v2244_v15, %v1091_v18 }
 0x5d2   :  { %v1101_v23 = vmax.f32 %v1097_v20, 0.0  ;;  %v1296_v20 = vld [vmem:[%s3467_s1 + $0x328] sm:$0xff] }
 0x5d3   :  { %v1037_v24 = vpop.f32.mrf.mxu0  ;;  %v1088_v44 = vpop.f32.mrf.mxu1  ;;  %1402 = vmatpush.msrb.mxu1 %v1296_v20 }
 0x5d4   :  { %v1038_v25 = vadd.f32 %v1037_v24, %v996_v19  ;;  %2150 = vmatmul.msk.f32.vlgmr.msra.gmra.mxu2 %vm47_vm2, %v1101_v23  ;;  %v1295_v23 = vld [vmem:[%s3467_s1 + $0x320] sm:$0xff] }
 0x5d5   :  { %1403 = vmatpush.msrb.mxu1 %v1295_v23 }
 0x5d6   :  { %v1092_v26 = vadd.f32 %v1082_v22, %v1038_v25  ;;  %v2999_v25 = vld [vmem:[%s3469_s2 + $0x110] sm:$0xff] }
 0x5d8   :  { %v1098_v28 = vadd.f32 %v2244_v15, %v1092_v26  ;;  %v1294_v26 = vld [vmem:[%s3467_s1 + $0x318] sm:$0xff] }
 0x5d9   :  { %1404 = vmatpush.msrb.mxu1 %v1294_v26  ;;  %v1572_v26 = vld [vmem:[%s3467_s1 + $0x3a8] sm:$0xff] }
 0x5da   :  { %v1102_v31 = vmax.f32 %v1098_v28, 0.0 }
 0x5db   :  { %v1040_v33 = vpop.f32.mrf.mxu0 }
 0x5dc   :  { %v1041_v34 = vadd.f32 %v1040_v33, %v999_v30  ;;  %2151 = vmatmul.msk.f32.gmra.mxu2 %vm47_vm2, %v1102_v31  ;;  %v1293_v31 = vld [vmem:[%s3467_s1 + $0x310] sm:$0xff] }
 0x5dd   :  { %1405 = vmatpush.msrb.mxu1 %v1293_v31  ;;  %v1707_v31 = vld [vmem:[%s3467_s1 + $0x3d0] sm:$0xff] }
 0x5de   :  { %v1093_v35 = vadd.f32 %v1085_v32, %v1041_v34  ;;  %v3016_v34 = vld [vmem:[%s3469_s2 + $0x118] sm:$0xff] }
 0x5df   :  { %1744 = vmatpush.msra.mxu1 %v1707_v31 }
 0x5e0   :  { %v1099_v36 = vadd.f32 %v2244_v15, %v1093_v35 }
 0x5e2   :  { %v1103_v38 = vmax.f32 %v1099_v36, 0.0 }
 0x5e3   :  { %v1043_v40 = vpop.f32.mrf.mxu0 }
 0x5e4   :  { %v1044_v42 = vadd.f32 %v1043_v40, %v1002_v39  ;;  %2152 = vmatmul.msk.f32.gmra.mxu2 %vm47_vm2, %v1103_v38  ;;  %v3026_v40 = vld [vmem:[%s3469_s2 + $0x120] sm:$0xff] }
 0x5e6   :  { %v1094_v45 = vadd.f32 %v1088_v44, %v1044_v42 }
 0x5e8   :  { %v1100_v46 = vadd.f32 %v2244_v15, %v1094_v45  ;;  %v2979_v15 = vld [vmem:[%s3469_s2 + $0x108] sm:$0xff] }
 0x5ea   :  { %v1104_v47 = vmax.f32 %v1100_v46, 0.0 }
 0x5ec   :  { %2153 = vmatmul.msk.f32.gmra.mxu2 %vm47_vm2, %v1104_v47  ;;  %v3036_v47 = vld [vmem:[%s3469_s2 + $0x128] sm:$0xff] }
 0x657   :  { %v1140_v43 = vpop.f32.mrf.mxu2 }
 0x658   :  { %v1141_v2 = vadd.f32 %v2245_v51, %v1140_v43 }
 0x65a   :  { %v1152_v1 = vadd.f32 %v1141_v2, %v2819_v37  ;;  %v1159_v37 = vld [vmem:[%s3470_s3 + $0x38] sm:$0xff] }
 0x65f   :  { %v1143_v48 = vpop.f32.mrf.mxu2 }
 0x660   :  { %v1144_v60 = vadd.f32 %v2245_v51, %v1143_v48 }
 0x662   :  { %v1153_v0 = vadd.f32 %v1144_v60, %v2824_v41  ;;  %v1158_v41 = vld [vmem:[%s3470_s3 + $0x30] sm:$0xff] }
 0x663   :  { %v3052_v60 = vld [vmem:[%s3469_s2 + $0x130] sm:$0xff] }
 0x667   :  { %v1146_v49 = vpop.f32.mrf.mxu2 }
 0x668   :  { %v1147_v56 = vadd.f32 %v2245_v51, %v1146_v49 }
 0x66a   :  { %v1154_v63 = vadd.f32 %v1147_v56, %v2832_v50  ;;  %v1160_v50 = vld [vmem:[%s3470_s3 + $0x40] sm:$0xff] }
 0x66b   :  { %v3047_v56 = vld [vmem:[%s3469_s2 + $0xc0] sm:$0xff] }
 0x66f   :  { %v1149_v54 = vpop.f32.mrf.mxu2 }
 0x670   :  { %v1150_v57 = vadd.f32 %v2245_v51, %v1149_v54 }
 0x672   :  { %v1155_v55 = vadd.f32 %v1150_v57, %v2841_v61  ;;  %v1157_v61 = vld [vmem:[%s3470_s3 + $0x28] sm:$0xff] }
 0x674   :  { %1200 = vmatpush.msrb.mxu3 %v1155_v55 }
 0x676   :  { %1201 = vmatpush.msrb.mxu3 %v1154_v63 }
 0x678   :  { %1202 = vmatpush.msrb.mxu3 %v1153_v0 }
 0x67a   :  { %1203 = vmatpush.msrb.mxu3 %v1152_v1 }
 0x67b   :  { %2154 = vmatmul.msk.f32.vlgmr.msrb.gmra.mxu3 %vm47_vm2, %v1156_v52 }
 0x683   :  { %2155 = vmatmul.msk.f32.gmra.mxu3 %vm47_vm2, %v1157_v61 }
 0x68b   :  { %2156 = vmatmul.msk.f32.gmra.mxu3 %vm47_vm2, %v1158_v41  ;;  %v3073_v41 = vld [vmem:[%s3469_s2 + $0xc8] sm:$0xff] }
 0x693   :  { %2157 = vmatmul.msk.f32.gmra.mxu3 %vm47_vm2, %v1159_v37  ;;  %v3078_v37 = vld [vmem:[%s3469_s2 + $0x138] sm:$0xff] }
 0x69b   :  { %2158 = vmatmul.msk.f32.gmra.mxu3 %vm47_vm2, %v1160_v50 }
 0x6a3   :  { %2159 = vmatmul.msk.f32.gmra.mxu3 %vm47_vm2, %v1161_v62 }
 0x6ab   :  { %2160 = vmatmul.msk.f32.gmra.mxu3 %vm47_vm2, %v1162_v8 }
 0x6b3   :  { %2161 = vmatmul.msk.f32.gmra.mxu3 %vm47_vm2, %v1163_v53 }
 0x6fe   :  { %v2952_v7 = vpop.f32.mrf.mxu3 }
 0x6ff   :  { %2162 = vmatmul.msk.f32.vlgmr.msrb.gmra.mxu0 %vm47_vm2, %v2952_v7  ;;  %v1261_v9 = vrot.slane %v2952_v7, 1  ;;  %v1229_v51 = vrot.slane %v2952_v7, 7  ;;  %v3109_v7 = vld [vmem:[%s3469_s2 + $0xe0] sm:$0xff] }
 0x706   :  { %v2956_v27 = vpop.f32.mrf.mxu3 }
 0x707   :  { %v1262_v13 = vrot.slane %v2956_v27, 1  ;;  %2163 = vmatmul.msk.f32.gmra.mxu0 %vm47_vm2, %v2956_v27  ;;  %v1230_v1 = vrot.slane %v2956_v27, 7 }
 0x709   :  { %v1275_v10 = vsel %vm32_vm0, %v1261_v9, %v1262_v13  ;;  %v1243_v61 = vsel %vm23_vm1, %v1229_v51, %v1230_v1 }
 0x70a   :  { %v1285_v11 = vmul.f32 %v2963_v17, %v1275_v10  ;;  %v1254_v50 = vmul.f32 %v3073_v41, %v1243_v61  ;;  %v3118_v10 = vld [vmem:[%s3469_s2 + $0xe8] sm:$0xff] }
 0x70c   :  { %2178 = vmatmul.msk.f32.vlgmr.msrb.gmra.mxu2 %vm47_vm2, %v1285_v11 }
 0x70e   :  { %v2973_v12 = vpop.f32.mrf.mxu3 }
 0x70f   :  { %v1263_v14 = vrot.slane %v2973_v12, 1  ;;  %2164 = vmatmul.msk.f32.gmra.mxu0 %vm47_vm2, %v2973_v12  ;;  %v1231_v8 = vrot.slane %v2973_v12, 7 }
 0x711   :  { %v1274_v18 = vsel %vm32_vm0, %v1262_v13, %v1263_v14  ;;  %v1242_v53 = vsel %vm23_vm1, %v1230_v1, %v1231_v8 }
 0x712   :  { %v1286_v19 = vmul.f32 %v2979_v15, %v1274_v18  ;;  %v1255_v59 = vmul.f32 %v3090_v3, %v1242_v53  ;;  %v3127_v18 = vld [vmem:[%s3469_s2 + $0xf0] sm:$0xff] }
 0x714   :  { %2179 = vmatmul.msk.f32.gmra.mxu2 %vm47_vm2, %v1286_v19 }
 0x716   :  { %v2990_v22 = vpop.f32.mrf.mxu3 }
 0x717   :  { %v1264_v24 = vrot.slane %v2990_v22, 1  ;;  %2165 = vmatmul.msk.f32.gmra.mxu0 %vm47_vm2, %v2990_v22  ;;  %v1232_v5 = vrot.slane %v2990_v22, 7  ;;  %v3136_v22 = vld [vmem:[%s3469_s2 + $0xf8] sm:$0xff] }
 0x719   :  { %v1273_v28 = vsel %vm32_vm0, %v1263_v14, %v1264_v24  ;;  %v1241_v16 = vsel %vm23_vm1, %v1231_v8, %v1232_v5 }
 0x71a   :  { %v1287_v30 = vmul.f32 %v2999_v25, %v1273_v28  ;;  %v1256_v58 = vmul.f32 %v3100_v21, %v1241_v16  ;;  %v1571_v28 = vld [vmem:[%s3467_s1 + $0x3a0] sm:$0xff] }
 0x71c   :  { %2180 = vmatmul.msk.f32.gmra.mxu2 %vm47_vm2, %v1287_v30  ;;  %v1570_v30 = vld [vmem:[%s3467_s1 + $0x398] sm:$0xff] }
 0x71e   :  { %v1217_v32 = vpop.f32.mrf.mxu3 }
 0x71f   :  { %v1265_v33 = vrot.slane %v1217_v32, 1  ;;  %2166 = vmatmul.msk.f32.gmra.mxu0 %vm47_vm2, %v1217_v32  ;;  %v1233_v4 = vrot.slane %v1217_v32, 7  ;;  %v1706_v32 = vld [vmem:[%s3467_s1 + $0x3c8] sm:$0xff] }
 0x720   :  { %1745 = vmatpush.msra.mxu1 %v1706_v32 }
 0x721   :  { %v1272_v35 = vsel %vm32_vm0, %v1264_v24, %v1265_v33  ;;  %v1240_v29 = vsel %vm23_vm1, %v1232_v5, %v1233_v4  ;;  %v1573_v24 = vld [vmem:[%s3467_s1 + $0x3b0] sm:$0xff] }
 0x722   :  { %v1288_v36 = vmul.f32 %v3016_v34, %v1272_v35  ;;  %v1257_v27 = vmul.f32 %v3109_v7, %v1240_v29  ;;  %1610 = vmatpush.msra.mxu3 %v1573_v24 }
 0x724   :  { %2181 = vmatmul.msk.f32.gmra.mxu2 %vm47_vm2, %v1288_v36  ;;  %1611 = vmatpush.msra.mxu3 %v1572_v26  ;;  %v1704_v36 = vld [vmem:[%s3467_s1 + $0x3b8] sm:$0xff] }
 0x726   :  { %v1220_v38 = vpop.f32.mrf.mxu3  ;;  %1612 = vmatpush.msra.mxu3 %v1571_v28 }
 0x727   :  { %v1266_v39 = vrot.slane %v1220_v38, 1  ;;  %2167 = vmatmul.msk.f32.gmra.mxu0 %vm47_vm2, %v1220_v38 }
 0x728   :  { %1613 = vmatpush.msra.mxu3 %v1570_v30 }
 0x729   :  { %v1271_v42 = vsel %vm32_vm0, %v1265_v33, %v1266_v39  ;;  %v1705_v33 = vld [vmem:[%s3467_s1 + $0x3c0] sm:$0xff] }
 0x72a   :  { %v1289_v44 = vmul.f32 %v3026_v40, %v1271_v42  ;;  %1746 = vmatpush.msra.mxu1 %v1705_v33 }
 0x72c   :  { %2182 = vmatmul.msk.f32.gmra.mxu2 %vm47_vm2, %v1289_v44  ;;  %1747 = vmatpush.msra.mxu1 %v1704_v36  ;;  %v1569_v44 = vld [vmem:[%s3467_s1 + $0x390] sm:$0xff] }
 0x72d   :  { %1675 = vmatpush.msra.mxu0 %v1569_v44 }
 0x72e   :  { %v1223_v45 = vpop.f32.mrf.mxu3 }
 0x72f   :  { %v1267_v46 = vrot.slane %v1223_v45, 1  ;;  %2168 = vmatmul.msk.f32.gmra.mxu0 %vm47_vm2, %v1223_v45  ;;  %v1235_v12 = vrot.slane %v1223_v45, 7 }
 0x731   :  { %v1270_v43 = vsel %vm32_vm0, %v1266_v39, %v1267_v46 }
 0x732   :  { %v1290_v48 = vmul.f32 %v3036_v47, %v1270_v43  ;;  %v3170_v43 = vld [vmem:[%s3467_s1 + $0x370] ss:$0 sm:$0xff] }
 0x734   :  { %2183 = vmatmul.msk.f32.gmra.mxu2 %vm47_vm2, %v1290_v48 }
 0x736   :  { %v1226_v49 = vpop.f32.mrf.mxu3 }
 0x737   :  { %v1236_v54 = vrot.slane %v1226_v49, 7  ;;  %v1268_v57 = vrot.slane %v1226_v49, 1  ;;  %2169 = vmatmul.msk.f32.gmra.mxu0 %vm47_vm2, %v1226_v49 }
 0x739   :  { %v1244_v55 = vsel %vm23_vm1, %v1236_v54, %v1229_v51  ;;  %v1269_v2 = vsel %vm32_vm0, %v1267_v46, %v1268_v57  ;;  %v1276_v52 = vsel %vm32_vm0, %v1268_v57, %v1261_v9  ;;  %v1234_v9 = vrot.slane %v1220_v38, 7 }
 0x73a   :  { %v1253_v63 = vmul.f32 %v3047_v56, %v1244_v55  ;;  %v1291_v0 = vmul.f32 %v3052_v60, %v1269_v2  ;;  %v1292_v62 = vmul.f32 %v3078_v37, %v1276_v52  ;;  %v1237_v20 = vsel %vm23_vm1, %v1235_v12, %v1236_v54  ;;  %v1568_v52 = vld [vmem:[%s3467_s1 + $0x388] sm:$0xff] }
 0x73b   :  { %v1239_v13 = vsel %vm23_vm1, %v1233_v4, %v1234_v9  ;;  %v1238_v14 = vsel %vm23_vm1, %v1234_v9, %v1235_v12  ;;  %v1260_v23 = vmul.f32 %v3136_v22, %v1237_v20  ;;  %1676 = vmatpush.msra.mxu0 %v1568_v52  ;;  %v1567_v20 = vld [vmem:[%s3467_s1 + $0x380] sm:$0xff] }
 0x73c   :  { %2170 = vmatmul.msk.f32.vlgmr.msrb.gmra.mxu1 %vm47_vm2, %v1253_v63  ;;  %2184 = vmatmul.msk.f32.gmra.mxu2 %vm47_vm2, %v1291_v0  ;;  %v1258_v11 = vmul.f32 %v3118_v10, %v1239_v13  ;;  %v1259_v19 = vmul.f32 %v3127_v18, %v1238_v14 }
 0x73d   :  { %1677 = vmatpush.msra.mxu0 %v1567_v20 }
 0x744   :  { %2171 = vmatmul.msk.f32.gmra.mxu1 %vm47_vm2, %v1254_v50  ;;  %2185 = vmatmul.msk.f32.gmra.mxu2 %vm47_vm2, %v1292_v62 }
 0x74c   :  { %2172 = vmatmul.msk.f32.gmra.mxu1 %vm47_vm2, %v1255_v59 }
 0x754   :  { %2173 = vmatmul.msk.f32.gmra.mxu1 %vm47_vm2, %v1256_v58 }
 0x75c   :  { %2174 = vmatmul.msk.f32.gmra.mxu1 %vm47_vm2, %v1257_v27 }
 0x764   :  { %2175 = vmatmul.msk.f32.gmra.mxu1 %vm47_vm2, %v1258_v11 }
 0x76c   :  { %2176 = vmatmul.msk.f32.gmra.mxu1 %vm47_vm2, %v1259_v19 }
 0x774   :  { %2177 = vmatmul.msk.f32.gmra.mxu1 %vm47_vm2, %v1260_v23  ;;  %v1566_v23 = vld [vmem:[%s3467_s1 + $0x378] sm:$0xff] }
 0x775   :  { %1678 = vmatpush.msra.mxu0 %v1566_v23 }
 0x77c   :  { %v1342_v35 = vpop.f32.mrf.mxu0 }
 0x784   :  { %v1345_v39 = vpop.f32.mrf.mxu0 }
 0x78c   :  { %v1348_v51 = vpop.f32.mrf.mxu0 }
 0x78f   :  { %v1476_v38 = vpop.f32.mrf.mxu2 }
 0x794   :  { %v1351_v61 = vpop.f32.mrf.mxu0 }
 0x797   :  { %v1479_v42 = vpop.f32.mrf.mxu2 }
 0x79c   :  { %v1354_v9 = vpop.f32.mrf.mxu0 }
 0x79f   :  { %v1482_v54 = vpop.f32.mrf.mxu2 }
 0x7a4   :  { %v1357_v32 = vpop.f32.mrf.mxu0 }
 0x7a7   :  { %v1485_v53 = vpop.f32.mrf.mxu2 }
 0x7af   :  { %v1488_v12 = vpop.f32.mrf.mxu2 }
 0x7b9   :  { %v1407_v45 = vpop.f32.mrf.mxu1 }
 0x7ba   :  { %v1408_v46 = vadd.f32 %v1407_v45, %v1342_v35  ;;  %v1491_v35 = vpop.f32.mrf.mxu2 }
 0x7bc   :  { %v1500_v48 = vadd.f32 %v1476_v38, %v1408_v46 }
 0x7be   :  { %v3173_v49 = vadd.f32 %v3170_v43, %v1500_v48  ;;  %v1360_v48 = vpop.f32.mrf.mxu0 }
 0x7c0   :  { %2186 = vmatmul.msk.f32.vlgmr.msra.gmra.mxu3 %vm47_vm2, %v3173_v49  ;;  %v1542_v0 = vrot.slane %v3173_v49, 1 }
 0x7c1   :  { %v1410_v57 = vpop.f32.mrf.mxu1 }
 0x7c2   :  { %v1411_v55 = vadd.f32 %v1410_v57, %v1345_v39 }
 0x7c4   :  { %v1501_v2 = vadd.f32 %v1479_v42, %v1411_v55 }
 0x7c6   :  { %v3178_v63 = vadd.f32 %v3170_v43, %v1501_v2 }
 0x7c8   :  { %v1543_v1 = vrot.slane %v3178_v63, 1  ;;  %2187 = vmatmul.msk.f32.gmra.mxu3 %vm47_vm2, %v3178_v63  ;;  %v1519_v23 = vrot.slane %v3178_v63, 7 }
 0x7c9   :  { %v1413_v50 = vpop.f32.mrf.mxu1 }
 0x7ca   :  { %v1556_v62 = vsel %vm32_vm0, %v1542_v0, %v1543_v1  ;;  %v1414_v8 = vadd.f32 %v1413_v50, %v1348_v51 }
 0x7cb   :  { %v1558_v59 = vmul.f32 %v1556_v62, %v2963_v17  ;;  %v1363_v62 = vpop.f32.mrf.mxu0 }
 0x7cc   :  { %v1502_v5 = vadd.f32 %v1482_v54, %v1414_v8  ;;  %v1494_v54 = vpop.f32.mrf.mxu2 }
 0x7cd   :  { %2202 = vmatmul.msk.f32.vlgmr.msra.gmra.mxu1 %vm47_vm2, %v1558_v59 }
 0x7ce   :  { %v3194_v16 = vadd.f32 %v3170_v43, %v1502_v5 }
 0x7d0   :  { %v1544_v58 = vrot.slane %v3194_v16, 1  ;;  %2188 = vmatmul.msk.f32.gmra.mxu3 %vm47_vm2, %v3194_v16 }
 0x7d1   :  { %v1416_v4 = vpop.f32.mrf.mxu1 }
 0x7d2   :  { %v1417_v29 = vadd.f32 %v1416_v4, %v1351_v61  ;;  %v1555_v27 = vsel %vm32_vm0, %v1543_v1, %v1544_v58 }
 0x7d3   :  { %v1559_v13 = vmul.f32 %v1555_v27, %v2979_v15  ;;  %v1518_v27 = vrot.slane %v3173_v49, 7 }
 0x7d4   :  { %v1503_v11 = vadd.f32 %v1485_v53, %v1417_v29  ;;  %v1497_v5 = vpop.f32.mrf.mxu2 }
 0x7d5   :  { %2203 = vmatmul.msk.f32.gmra.mxu1 %vm47_vm2, %v1559_v13 }
 0x7d6   :  { %v3204_v14 = vadd.f32 %v3170_v43, %v1503_v11 }
 0x7d8   :  { %v1545_v19 = vrot.slane %v3204_v14, 1  ;;  %2189 = vmatmul.msk.f32.gmra.mxu3 %vm47_vm2, %v3204_v14  ;;  %v1521_v49 = vrot.slane %v3204_v14, 7 }
 0x7d9   :  { %v1419_v24 = vpop.f32.mrf.mxu1 }
 0x7da   :  { %v1420_v26 = vadd.f32 %v1419_v24, %v1354_v9  ;;  %v1554_v28 = vsel %vm32_vm0, %v1544_v58, %v1545_v19 }
 0x7db   :  { %v1560_v30 = vmul.f32 %v1554_v28, %v2999_v25 }
 0x7dc   :  { %v1504_v31 = vadd.f32 %v1488_v12, %v1420_v26 }
 0x7dd   :  { %2204 = vmatmul.msk.f32.gmra.mxu1 %vm47_vm2, %v1560_v30  ;;  %v1520_v30 = vrot.slane %v3194_v16, 7 }
 0x7de   :  { %v3220_v33 = vadd.f32 %v3170_v43, %v1504_v31 }
 0x7df   :  { %v1531_v63 = vsel %vm23_vm1, %v1519_v23, %v1520_v30 }
 0x7e0   :  { %v1546_v36 = vrot.slane %v3220_v33, 1  ;;  %2190 = vmatmul.msk.f32.gmra.mxu3 %vm47_vm2, %v3220_v33  ;;  %v1536_v31 = vmul.f32 %v1531_v63, %v3090_v3  ;;  %v1522_v16 = vrot.slane %v3220_v33, 7  ;;  %v1849_v63 = vld [vmem:[%s3467_s1 + $0x3f0] sm:$0xff] }
 0x7e1   :  { %v1422_v38 = vpop.f32.mrf.mxu1 }
 0x7e2   :  { %v1423_v39 = vadd.f32 %v1422_v38, %v1357_v32  ;;  %v1553_v42 = vsel %vm32_vm0, %v1545_v19, %v1546_v36 }
 0x7e3   :  { %v1561_v44 = vmul.f32 %v1553_v42, %v3016_v34 }
 0x7e4   :  { %v1505_v45 = vadd.f32 %v1491_v35, %v1423_v39  ;;  %v1529_v35 = vsel %vm23_vm1, %v1521_v49, %v1522_v16 }
 0x7e5   :  { %2205 = vmatmul.msk.f32.gmra.mxu1 %vm47_vm2, %v1561_v44 }
 0x7e6   :  { %v1515_v46 = vadd.f32 %v3170_v43, %v1505_v45 }
 0x7e8   :  { %v1547_v51 = vrot.slane %v1515_v46, 1  ;;  %2191 = vmatmul.msk.f32.gmra.mxu3 %vm47_vm2, %v1515_v46  ;;  %v1523_v38 = vrot.slane %v1515_v46, 7 }
 0x7e9   :  { %v1425_v57 = vpop.f32.mrf.mxu1 }
 0x7ea   :  { %v1426_v55 = vadd.f32 %v1425_v57, %v1360_v48  ;;  %v1552_v2 = vsel %vm32_vm0, %v1546_v36, %v1547_v51  ;;  %v1538_v36 = vmul.f32 %v1529_v35, %v3109_v7  ;;  %v1528_v14 = vsel %vm23_vm1, %v1522_v16, %v1523_v38  ;;  %v1854_v48 = vld [vmem:[%s3467_s1 + $0x418] sm:$0xff]  ;;  %v1851_v57 = vld [vmem:[%s3467_s1 + $0x400] sm:$0xff] }
 0x7eb   :  { %v1562_v1 = vmul.f32 %v1552_v2, %v3026_v40  ;;  %v1539_v39 = vmul.f32 %v1528_v14, %v3118_v10  ;;  %1891 = vmatpush.msra.mxu2 %v1854_v48  ;;  %v1987_v2 = vld [vmem:[%s3467_s1 + $0x430] sm:$0xff] }
 0x7ec   :  { %v1506_v52 = vadd.f32 %v1494_v54, %v1426_v55  ;;  %v1852_v54 = vld [vmem:[%s3467_s1 + $0x408] sm:$0xff]  ;;  %v1988_v55 = vld [vmem:[%s3467_s1 + $0x438] sm:$0xff] }
 0x7ed   :  { %2206 = vmatmul.msk.f32.gmra.mxu1 %vm47_vm2, %v1562_v1  ;;  %2025 = vmatpush.msrb.mxu0 %v1988_v55 }
 0x7ee   :  { %v1516_v61 = vadd.f32 %v3170_v43, %v1506_v52  ;;  %v1986_v52 = vld [vmem:[%s3467_s1 + $0x428] sm:$0xff] }
 0x7ef   :  { %2026 = vmatpush.msrb.mxu0 %v1987_v2 }
 0x7f0   :  { %v1548_v50 = vrot.slane %v1516_v61, 1  ;;  %2192 = vmatmul.msk.f32.gmra.mxu3 %vm47_vm2, %v1516_v61  ;;  %v1524_v42 = vrot.slane %v1516_v61, 7 }
 0x7f1   :  { %v1428_v8 = vpop.f32.mrf.mxu1  ;;  %2027 = vmatpush.msrb.mxu0 %v1986_v52  ;;  %v1847_v52 = vld [vmem:[%s3467_s1 + $0x3e0] sm:$0xff] }
 0x7f2   :  { %v1429_v53 = vadd.f32 %v1428_v8, %v1363_v62  ;;  %v1551_v59 = vsel %vm32_vm0, %v1547_v51, %v1548_v50  ;;  %v1527_v33 = vsel %vm23_vm1, %v1523_v38, %v1524_v42  ;;  %v1853_v51 = vld [vmem:[%s3467_s1 + $0x410] sm:$0xff] }
 0x7f3   :  { %v1563_v58 = vmul.f32 %v1551_v59, %v3036_v47  ;;  %v1540_v44 = vmul.f32 %v1527_v33, %v3127_v18  ;;  %1892 = vmatpush.msra.mxu2 %v1853_v51 }
 0x7f4   :  { %v1507_v4 = vadd.f32 %v1497_v5, %v1429_v53  ;;  %v3317_v5 = vld [vmem:[%s3467_s1 + $0x3d8] ss:$0 sm:$0xff] }
 0x7f5   :  { %2207 = vmatmul.msk.f32.gmra.mxu1 %vm47_vm2, %v1563_v58  ;;  %1893 = vmatpush.msra.mxu2 %v1852_v54  ;;  %v1850_v58 = vld [vmem:[%s3467_s1 + $0x3f8] sm:$0xff] }
 0x7f6   :  { %v1517_v29 = vadd.f32 %v3170_v43, %v1507_v4  ;;  %v1532_v43 = vsel %vm23_vm1, %v1518_v27, %v1519_v23  ;;  %1956 = vmatpush.msrb.mxu3 %v1850_v58 }
 0x7f7   :  { %v1535_v26 = vmul.f32 %v1532_v43, %v3073_v41  ;;  %1894 = vmatpush.msra.mxu2 %v1851_v57  ;;  %v1848_v57 = vld [vmem:[%s3467_s1 + $0x3e8] sm:$0xff] }
 0x7f8   :  { %v1525_v9 = vrot.slane %v1517_v29, 7  ;;  %v1549_v13 = vrot.slane %v1517_v29, 1  ;;  %2193 = vmatmul.msk.f32.gmra.mxu3 %vm47_vm2, %v1517_v29 }
 0x7f9   :  { %1957 = vmatpush.msrb.mxu3 %v1849_v63 }
 0x7fa   :  { %v1533_v11 = vsel %vm23_vm1, %v1525_v9, %v1518_v27  ;;  %v1550_v12 = vsel %vm32_vm0, %v1548_v50, %v1549_v13  ;;  %v1557_v24 = vsel %vm32_vm0, %v1549_v13, %v1542_v0  ;;  %v1530_v0 = vsel %vm23_vm1, %v1520_v30, %v1521_v49  ;;  %v1985_v50 = vld [vmem:[%s3467_s1 + $0x420] sm:$0xff] }
 0x7fb   :  { %v1534_v19 = vmul.f32 %v1533_v11, %v3047_v56  ;;  %v1564_v20 = vmul.f32 %v1550_v12, %v3052_v60  ;;  %v1565_v28 = vmul.f32 %v1557_v24, %v3078_v37  ;;  %v1537_v32 = vmul.f32 %v1530_v0, %v3100_v21  ;;  %2028 = vmatpush.msrb.mxu0 %v1985_v50 }
 0x7fc   :  { %v1526_v45 = vsel %vm23_vm1, %v1524_v42, %v1525_v9  ;;  %1958 = vmatpush.msrb.mxu3 %v1848_v57 }
 0x7fd   :  { %2194 = vmatmul.msk.f32.vlgmr.msra.gmra.mxu0 %vm47_vm2, %v1534_v19  ;;  %2208 = vmatmul.msk.f32.gmra.mxu1 %vm47_vm2, %v1564_v20  ;;  %v1541_v46 = vmul.f32 %v1526_v45, %v3136_v22 }
 0x7fe   :  { %1959 = vmatpush.msrb.mxu3 %v1847_v52 }
 0x805   :  { %2195 = vmatmul.msk.f32.gmra.mxu0 %vm47_vm2, %v1535_v26  ;;  %2209 = vmatmul.msk.f32.gmra.mxu1 %vm47_vm2, %v1565_v28 }
 0x80d   :  { %2196 = vmatmul.msk.f32.gmra.mxu0 %vm47_vm2, %v1536_v31 }
 0x815   :  { %2197 = vmatmul.msk.f32.gmra.mxu0 %vm47_vm2, %v1537_v32 }
 0x81d   :  { %2198 = vmatmul.msk.f32.gmra.mxu0 %vm47_vm2, %v1538_v36 }
 0x825   :  { %2199 = vmatmul.msk.f32.gmra.mxu0 %vm47_vm2, %v1539_v39 }
 0x82d   :  { %2200 = vmatmul.msk.f32.gmra.mxu0 %vm47_vm2, %v1540_v44 }
 0x835   :  { %2201 = vmatmul.msk.f32.gmra.mxu0 %vm47_vm2, %v1541_v46 }
 0x843   :  { %v1615_v1 = vpop.f32.mrf.mxu3 }
 0x84a   :  { %v1749_v61 = vpop.f32.mrf.mxu1 }
 0x84b   :  { %v1618_v62 = vpop.f32.mrf.mxu3 }
 0x852   :  { %v1752_v8 = vpop.f32.mrf.mxu1 }
 0x853   :  { %v1621_v27 = vpop.f32.mrf.mxu3 }
 0x85a   :  { %v1755_v13 = vpop.f32.mrf.mxu1 }
 0x85b   :  { %v1624_v43 = vpop.f32.mrf.mxu3 }
 0x862   :  { %v1758_v31 = vpop.f32.mrf.mxu1 }
 0x863   :  { %v1627_v39 = vpop.f32.mrf.mxu3 }
 0x86a   :  { %v1761_v44 = vpop.f32.mrf.mxu1 }
 0x86b   :  { %v1630_v2 = vpop.f32.mrf.mxu3 }
 0x872   :  { %v1764_v50 = vpop.f32.mrf.mxu1 }
 0x87a   :  { %v1680_v53 = vpop.f32.mrf.mxu0 }
 0x87b   :  { %v1681_v59 = vadd.f32 %v1680_v53, %v1615_v1 }
 0x87d   :  { %v1773_v4 = vadd.f32 %v1749_v61, %v1681_v59 }
 0x87f   :  { %v1783_v29 = vadd.f32 %v3317_v5, %v1773_v4 }
 0x881   :  { %v3323_v9 = vmax.f32 %v1783_v29, 0.0 }
 0x882   :  { %v1683_v11 = vpop.f32.mrf.mxu0 }
 0x883   :  { %v1684_v12 = vadd.f32 %v1683_v11, %v1618_v62  ;;  %2210 = vmatmul.msk.f32.vlgmr.msra.gmra.mxu2 %vm47_vm2, %v3323_v9  ;;  %v1823_v26 = vrot.slane %v3323_v9, 1  ;;  %v1767_v11 = vpop.f32.mrf.mxu1 }
 0x885   :  { %v1774_v19 = vadd.f32 %v1752_v8, %v1684_v12 }
 0x887   :  { %v1784_v20 = vadd.f32 %v3317_v5, %v1774_v19 }
 0x889   :  { %v3328_v23 = vmax.f32 %v1784_v20, 0.0 }
 0x88a   :  { %v1686_v24 = vpop.f32.mrf.mxu0 }
 0x88b   :  { %v1824_v28 = vrot.slane %v3328_v23, 1  ;;  %v1687_v30 = vadd.f32 %v1686_v24, %v1621_v27  ;;  %2211 = vmatmul.msk.f32.gmra.mxu2 %vm47_vm2, %v3328_v23  ;;  %v1633_v27 = vpop.f32.mrf.mxu3 }
 0x88d   :  { %v1837_v49 = vsel %vm32_vm0, %v1823_v26, %v1824_v28  ;;  %v1775_v0 = vadd.f32 %v1755_v13, %v1687_v30 }
 0x88e   :  { %v1839_v32 = vmul.f32 %v1837_v49, %v2963_v17 }
 0x88f   :  { %v1785_v16 = vadd.f32 %v3317_v5, %v1775_v0 }
 0x890   :  { %2226 = vmatmul.msk.f32.vlgmr.msrb.gmra.mxu0 %vm47_vm2, %v1839_v32  ;;  %v1770_v32 = vpop.f32.mrf.mxu1 }
 0x891   :  { %v3344_v35 = vmax.f32 %v1785_v16, 0.0 }
 0x892   :  { %v1689_v36 = vpop.f32.mrf.mxu0 }
 0x893   :  { %v1825_v38 = vrot.slane %v3344_v35, 1  ;;  %v1690_v14 = vadd.f32 %v1689_v36, %v1624_v43  ;;  %2212 = vmatmul.msk.f32.gmra.mxu2 %vm47_vm2, %v3344_v35  ;;  %v1636_v63 = vpop.f32.mrf.mxu3 }
 0x895   :  { %v1776_v42 = vadd.f32 %v1758_v31, %v1690_v14  ;;  %v1836_v33 = vsel %vm32_vm0, %v1824_v28, %v1825_v38 }
 0x896   :  { %v1840_v17 = vmul.f32 %v1836_v33, %v2979_v15 }
 0x897   :  { %v1786_v45 = vadd.f32 %v3317_v5, %v1776_v42 }
 0x898   :  { %2227 = vmatmul.msk.f32.gmra.mxu0 %vm47_vm2, %v1840_v17 }
 0x899   :  { %v3354_v46 = vmax.f32 %v1786_v45, 0.0 }
 0x89a   :  { %v1692_v48 = vpop.f32.mrf.mxu0 }
 0x89b   :  { %v1826_v51 = vrot.slane %v3354_v46, 1  ;;  %v1693_v54 = vadd.f32 %v1692_v48, %v1627_v39  ;;  %2213 = vmatmul.msk.f32.gmra.mxu2 %vm47_vm2, %v3354_v46  ;;  %v1799_v39 = vrot.slane %v3323_v9, 7  ;;  %v1802_v9 = vrot.slane %v3354_v46, 7 }
 0x89d   :  { %v1777_v55 = vadd.f32 %v1761_v44, %v1693_v54  ;;  %v1835_v15 = vsel %vm32_vm0, %v1825_v38, %v1826_v51 }
 0x89e   :  { %v1841_v1 = vmul.f32 %v1835_v15, %v2999_v25 }
 0x89f   :  { %v1787_v61 = vadd.f32 %v3317_v5, %v1777_v55 }
 0x8a0   :  { %2228 = vmatmul.msk.f32.gmra.mxu0 %vm47_vm2, %v1841_v1 }
 0x8a1   :  { %v3370_v62 = vmax.f32 %v1787_v61, 0.0 }
 0x8a2   :  { %v1695_v8 = vpop.f32.mrf.mxu0 }
 0x8a3   :  { %v1827_v53 = vrot.slane %v3370_v62, 1  ;;  %v1696_v59 = vadd.f32 %v1695_v8, %v1630_v2  ;;  %2214 = vmatmul.msk.f32.gmra.mxu2 %vm47_vm2, %v3370_v62 }
 0x8a5   :  { %v1778_v25 = vadd.f32 %v1764_v50, %v1696_v59  ;;  %v1834_v58 = vsel %vm32_vm0, %v1826_v51, %v1827_v53  ;;  %v2248_v59 = vld [vmem:[%s3467_s1 + $0x440] ss:$0 sm:$0xff] }
 0x8a6   :  { %v1842_v4 = vmul.f32 %v1834_v58, %v3016_v34 }
 0x8a7   :  { %v1788_v29 = vadd.f32 %v3317_v5, %v1778_v25 }
 0x8a8   :  { %2229 = vmatmul.msk.f32.gmra.mxu0 %vm47_vm2, %v1842_v4 }
 0x8a9   :  { %v1796_v13 = vmax.f32 %v1788_v29, 0.0 }
 0x8aa   :  { %v1698_v12 = vpop.f32.mrf.mxu0 }
 0x8ab   :  { %v1828_v19 = vrot.slane %v1796_v13, 1  ;;  %v1699_v20 = vadd.f32 %v1698_v12, %v1633_v27  ;;  %2215 = vmatmul.msk.f32.gmra.mxu2 %vm47_vm2, %v1796_v13  ;;  %v1804_v15 = vrot.slane %v1796_v13, 7 }
 0x8ad   :  { %v1779_v43 = vadd.f32 %v1767_v11, %v1699_v20  ;;  %v1833_v24 = vsel %vm32_vm0, %v1827_v53, %v1828_v19 }
 0x8ae   :  { %v1843_v28 = vmul.f32 %v1833_v24, %v3026_v40 }
 0x8af   :  { %v1789_v34 = vadd.f32 %v3317_v5, %v1779_v43 }
 0x8b0   :  { %2230 = vmatmul.msk.f32.gmra.mxu0 %vm47_vm2, %v1843_v28 }
 0x8b1   :  { %v1797_v30 = vmax.f32 %v1789_v34, 0.0 }
 0x8b2   :  { %v1701_v31 = vpop.f32.mrf.mxu0 }
 0x8b3   :  { %v1829_v49 = vrot.slane %v1797_v30, 1  ;;  %v1702_v0 = vadd.f32 %v1701_v31, %v1636_v63  ;;  %2216 = vmatmul.msk.f32.gmra.mxu2 %vm47_vm2, %v1797_v30  ;;  %v1805_v2 = vrot.slane %v1797_v30, 7 }
 0x8b5   :  { %v1780_v16 = vadd.f32 %v1770_v32, %v1702_v0  ;;  %v1832_v36 = vsel %vm32_vm0, %v1828_v19, %v1829_v49 }
 0x8b6   :  { %v1844_v38 = vmul.f32 %v1832_v36, %v3036_v47 }
 0x8b7   :  { %v1790_v40 = vadd.f32 %v3317_v5, %v1780_v16  ;;  %v1800_v5 = vrot.slane %v3328_v23, 7 }
 0x8b8   :  { %2231 = vmatmul.msk.f32.gmra.mxu0 %vm47_vm2, %v1844_v38 }
 0x8b9   :  { %v1798_v14 = vmax.f32 %v1790_v40, 0.0  ;;  %v1813_v48 = vsel %vm23_vm1, %v1799_v39, %v1800_v5 }
 0x8ba   :  { %v1816_v54 = vmul.f32 %v1813_v48, %v3073_v41 }
 0x8bb   :  { %v1806_v42 = vrot.slane %v1798_v14, 7  ;;  %v1830_v33 = vrot.slane %v1798_v14, 1  ;;  %2217 = vmatmul.msk.f32.gmra.mxu2 %vm47_vm2, %v1798_v14 }
 0x8bd   :  { %v1814_v44 = vsel %vm23_vm1, %v1806_v42, %v1799_v39  ;;  %v1831_v17 = vsel %vm32_vm0, %v1829_v49, %v1830_v33  ;;  %v1838_v51 = vsel %vm32_vm0, %v1830_v33, %v1823_v26  ;;  %v1803_v26 = vrot.slane %v3370_v62, 7 }
 0x8be   :  { %v1815_v45 = vmul.f32 %v1814_v44, %v3047_v56  ;;  %v1845_v47 = vmul.f32 %v1831_v17, %v3052_v60  ;;  %v1846_v56 = vmul.f32 %v1838_v51, %v3078_v37  ;;  %v1801_v60 = vrot.slane %v3344_v35, 7 }
 0x8bf   :  { %v1810_v35 = vsel %vm23_vm1, %v1802_v9, %v1803_v26 }
 0x8c0   :  { %2218 = vmatmul.msk.f32.vlgmr.msrb.gmra.mxu3 %vm47_vm2, %v1815_v45  ;;  %2232 = vmatmul.msk.f32.gmra.mxu0 %vm47_vm2, %v1845_v47  ;;  %v1812_v23 = vsel %vm23_vm1, %v1800_v5, %v1801_v60  ;;  %v1811_v41 = vsel %vm23_vm1, %v1801_v60, %v1802_v9  ;;  %v1819_v55 = vmul.f32 %v1810_v35, %v3109_v7 }
 0x8c1   :  { %v1817_v57 = vmul.f32 %v1812_v23, %v3090_v3  ;;  %v1818_v37 = vmul.f32 %v1811_v41, %v3100_v21  ;;  %v1809_v3 = vsel %vm23_vm1, %v1803_v26, %v1804_v15  ;;  %v1808_v21 = vsel %vm23_vm1, %v1804_v15, %v1805_v2 }
 0x8c2   :  { %v1820_v46 = vmul.f32 %v1809_v3, %v3118_v10  ;;  %v1821_v1 = vmul.f32 %v1808_v21, %v3127_v18  ;;  %v1807_v7 = vsel %vm23_vm1, %v1805_v2, %v1806_v42 }
 0x8c3   :  { %v1822_v52 = vmul.f32 %v1807_v7, %v3136_v22 }
 0x8c8   :  { %2219 = vmatmul.msk.f32.gmra.mxu3 %vm47_vm2, %v1816_v54  ;;  %2233 = vmatmul.msk.f32.gmra.mxu0 %vm47_vm2, %v1846_v56 }
 0x8d0   :  { %2220 = vmatmul.msk.f32.gmra.mxu3 %vm47_vm2, %v1817_v57 }
 0x8d8   :  { %2221 = vmatmul.msk.f32.gmra.mxu3 %vm47_vm2, %v1818_v37 }
 0x8e0   :  { %2222 = vmatmul.msk.f32.gmra.mxu3 %vm47_vm2, %v1819_v55 }
 0x8e8   :  { %2223 = vmatmul.msk.f32.gmra.mxu3 %vm47_vm2, %v1820_v46 }
 0x8f0   :  { %2224 = vmatmul.msk.f32.gmra.mxu3 %vm47_vm2, %v1821_v1 }
 0x8f8   :  { %2225 = vmatmul.msk.f32.gmra.mxu3 %vm47_vm2, %v1822_v52 }
 0x906   :  { %v1896_v61 = vpop.f32.mrf.mxu2 }
 0x90d   :  { %v2030_v50 = vpop.f32.mrf.mxu0 }
 0x90e   :  { %v1899_v10 = vpop.f32.mrf.mxu2 }
 0x915   :  { %v2033_v62 = vpop.f32.mrf.mxu0 }
 0x916   :  { %v1902_v58 = vpop.f32.mrf.mxu2 }
 0x91d   :  { %v2036_v6 = vpop.f32.mrf.mxu0 }
 0x91e   :  { %v1905_v13 = vpop.f32.mrf.mxu2 }
 0x925   :  { %v2039_v19 = vpop.f32.mrf.mxu0 }
 0x926   :  { %v1908_v34 = vpop.f32.mrf.mxu2 }
 0x92d   :  { %v2042_v63 = vpop.f32.mrf.mxu0 }
 0x92e   :  { %v1911_v16 = vpop.f32.mrf.mxu2 }
 0x935   :  { %v2045_v38 = vpop.f32.mrf.mxu0 }
 0x936   :  { %v1914_v33 = vpop.f32.mrf.mxu2 }
 0x93d   :  { %v2048_v44 = vpop.f32.mrf.mxu0 }
 0x93e   :  { %v1917_v48 = vpop.f32.mrf.mxu2 }
 0x943   :  { %v1961_v8 = vpop.f32.mrf.mxu3 }
 0x944   :  { %v1962_v53 = vadd.f32 %v1961_v8, %v1896_v61 }
 0x945   :  { %v2051_v56 = vpop.f32.mrf.mxu0 }
 0x946   :  { %v2054_v18 = vadd.f32 %v2030_v50, %v1962_v53 }
 0x948   :  { %v2064_v25 = vadd.f32 %v2248_v59, %v2054_v18 }
 0x94a   :  { %2072 = vst [vmem:[%s3471_s4] sm:$0xff] %v2064_v25 }
 0x94b   :  { %v1964_v22 = vpop.f32.mrf.mxu3 }
 0x94c   :  { %v1965_v4 = vadd.f32 %v1964_v22, %v1899_v10 }
 0x94e   :  { %v2055_v29 = vadd.f32 %v2033_v62, %v1965_v4 }
 0x950   :  { %v2065_v27 = vadd.f32 %v2248_v59, %v2055_v29 }
 0x952   :  { %2073 = vst [vmem:[%s3471_s4 + $0x8] sm:$0xff] %v2065_v27 }
 0x953   :  { %v1967_v11 = vpop.f32.mrf.mxu3 }
 0x954   :  { %v1968_v12 = vadd.f32 %v1967_v11, %v1902_v58 }
 0x956   :  { %v2056_v20 = vadd.f32 %v2036_v6, %v1968_v12 }
 0x958   :  { %v2066_v43 = vadd.f32 %v2248_v59, %v2056_v20 }
 0x95a   :  { %2074 = vst [vmem:[%s3471_s4 + $0x10] sm:$0xff] %v2066_v43 }
 0x95b   :  { %v1970_v24 = vpop.f32.mrf.mxu3 }
 0x95c   :  { %v1971_v28 = vadd.f32 %v1970_v24, %v1905_v13 }
 0x95e   :  { %v2057_v30 = vadd.f32 %v2039_v19, %v1971_v28 }
 0x960   :  { %v2067_v31 = vadd.f32 %v2248_v59, %v2057_v30 }
 0x962   :  { %2075 = vst [vmem:[%s3471_s4 + $0x18] sm:$0xff] %v2067_v31 }
 0x963   :  { %v1973_v49 = vpop.f32.mrf.mxu3 }
 0x964   :  { %v1974_v0 = vadd.f32 %v1973_v49, %v1908_v34 }
 0x966   :  { %v2058_v32 = vadd.f32 %v2042_v63, %v1974_v0 }
 0x968   :  { %v2068_v36 = vadd.f32 %v2248_v59, %v2058_v32 }
 0x96a   :  { %2076 = vst [vmem:[%s3471_s4 + $0x20] sm:$0xff] %v2068_v36 }
 0x96b   :  { %v1976_v40 = vpop.f32.mrf.mxu3 }
 0x96c   :  { %v1977_v14 = vadd.f32 %v1976_v40, %v1911_v16 }
 0x96e   :  { %v2059_v39 = vadd.f32 %v2045_v38, %v1977_v14 }
 0x970   :  { %v2069_v42 = vadd.f32 %v2248_v59, %v2059_v39 }
 0x972   :  { %2077 = vst [vmem:[%s3471_s4 + $0x28] sm:$0xff] %v2069_v42 }
 0x973   :  { %v1979_v17 = vpop.f32.mrf.mxu3 }
 0x974   :  { %v1980_v45 = vadd.f32 %v1979_v17, %v1914_v33 }
 0x976   :  { %v2060_v47 = vadd.f32 %v2048_v44, %v1980_v45 }
 0x978   :  { %v2070_v5 = vadd.f32 %v2248_v59, %v2060_v47 }
 0x97a   :  { %2078 = vst [vmem:[%s3471_s4 + $0x30] sm:$0xff] %v2070_v5 }
 0x97b   :  { %v1982_v51 = vpop.f32.mrf.mxu3 }
 0x97c   :  { %v1983_v54 = vadd.f32 %v1982_v51, %v1917_v48 }
 0x97e   :  { %v2061_v60 = vadd.f32 %v2051_v56, %v1983_v54 }
 0x980   :  { %v2071_v23 = vadd.f32 %v2248_v59, %v2061_v60 }
 0x982   :  { %2079 = vst [vmem:[%s3471_s4 + $0x38] sm:$0xff] %v2071_v23 }

</bundles_post_ra>
